<compile_context>
chip_gen: v7x
topology: tpu7x:2x2x1
jax: 0.10.0
libtpu: 0.0.40
codegen_flags: <defaults>
</compile_context>

<pallas_src>
import functools

import jax
import jax.numpy as jnp
from jax.experimental import pallas as pl
from jax.experimental.pallas import tpu as pltpu

EPS = 1e-5                         # torch.nn.BatchNorm2d default eps
LANE = 128                         # lane width; channel dims padded to this
VMEM_LIMIT = 48 * 1024 * 1024      # headroom under v7x's 64 MiB/TC physical VMEM
ACC_BUDGET_BYTES = 2 * 1024 * 1024  # target size of the f32 conv accumulator


def _round_up(n, m=LANE):
    return ((n + m - 1) // m) * m


def _pick_row_tile(h, w, c):
    """Largest divisor TH of H whose f32 accumulator (TH*W*C*4 B) fits the budget."""
    best = 1
    for th in range(1, h + 1):
        if h % th == 0 and th * w * c * 4 <= ACC_BUDGET_BYTES:
            best = th
    return best


# ---------------------------------------------------------------------------
# Fused: [optional relu(x*scale+shift) on the input window]
#        -> Conv2d 3x3 (pad=1, bias-free) -> per-tile per-channel mean / ssd
# ---------------------------------------------------------------------------
def conv_bn_stats_kernel(xm_ref, xt_ref, xb_ref, w_ref, scale_ref, shift_ref,
                         y_ref, mean_ref, ssd_ref, acc_ref, *, fuse_input):
    # xm_ref  : (TH, W, Cin)    rows [t*TH, t*TH+TH) of the input, bf16
    # xt_ref  : (1,  W, Cin)    row  t*TH-1  (clamped; zeroed when t == 0)
    # xb_ref  : (1,  W, Cin)    row  t*TH+TH (clamped; zeroed when t == T-1)
    # w_ref   : (3, 3*Cin, Cout) per-kh weights (kw-major, cin-minor), bf16
    # scale/shift_ref : (1, Cin) f32  previous layer's BN+ReLU (fused input)
    # y_ref   : (TH, W, Cout)   bias-free conv output (pre-BN), bf16
    # mean_ref: (1, Cout)       per-tile channel mean of the f32 accumulator
    # ssd_ref : (1, Cout)       per-tile sum((acc - mean)^2)
    # acc_ref : (TH*W, Cout)    f32 VMEM scratch accumulator
    TH, W, Cin = xm_ref.shape
    _, _, Cout = y_ref.shape
    t = pl.program_id(1)
    last = pl.num_programs(1) - 1

    top = xt_ref[...]
    mid = xm_ref[...]
    bot = xb_ref[...]

    if fuse_input:
        sc = scale_ref[...]
        sh = shift_ref[...]

        def xform(v):
            h = jnp.maximum(v.astype(jnp.float32) * sc + sh, 0.0)
            return h.astype(jnp.bfloat16)

        top, mid, bot = xform(top), xform(mid), xform(bot)

    # Out-of-image halo rows (top of tile 0 / bottom of the last tile) must be
    # zero *after* the fused transform (zero-padded post-ReLU activations).
    top = jnp.where(t == 0, jnp.zeros_like(top), top)
    bot = jnp.where(t == last, jnp.zeros_like(bot), bot)

    x = jnp.concatenate([top, mid, bot], axis=0)               # (TH+2, W, Cin)

    # kw taps as zero-filled column shifts (no padded columns stored in HBM),
    # merged once into the contraction dim (lane concat -> K = 3*Cin).
    zcol = jnp.zeros((TH + 2, 1, Cin), x.dtype)
    x_km1 = jnp.concatenate([zcol, x[:, :W - 1, :]], axis=1)   # input col j-1
    x_kp1 = jnp.concatenate([x[:, 1:, :], zcol], axis=1)       # input col j+1
    xcat = jnp.concatenate([x_km1, x, x_kp1], axis=-1)         # (TH+2, W, 3*Cin)

    # 3 fat MXU dots (one per kh tap), accumulated in the VMEM scratch.
    acc_ref[...] = jnp.dot(xcat[0:TH].reshape(TH * W, 3 * Cin), w_ref[0],
                           preferred_element_type=jnp.float32)
    acc_ref[...] += jnp.dot(xcat[1:TH + 1].reshape(TH * W, 3 * Cin), w_ref[1],
                            preferred_element_type=jnp.float32)
    acc_ref[...] += jnp.dot(xcat[2:TH + 2].reshape(TH * W, 3 * Cin), w_ref[2],
                            preferred_element_type=jnp.float32)

    acc = acc_ref[...]
    y_ref[...] = acc.reshape(TH, W, Cout).astype(y_ref.dtype)

    # Tile-local BatchNorm statistics from the f32 accumulator; combined
    # across tiles/images in the wrapper with the parallel-variance formula.
    mean = jnp.sum(acc, axis=0, keepdims=True) * (1.0 / (TH * W))
    diff = acc - mean
    mean_ref[...] = mean
    ssd_ref[...] = jnp.sum(diff * diff, axis=0, keepdims=True)


def conv_bn_stats(x, w, scale, shift, th, *, fuse_input):
    # x: (N, H, W, Cin) bf16 (no spatial padding); w: (3, 3*Cin, Cout) bf16.
    N, H, W, Cin = x.shape
    Cout = w.shape[-1]
    T = H // th
    kernel = functools.partial(conv_bn_stats_kernel, fuse_input=fuse_input)
    return pl.pallas_call(
        kernel,
        out_shape=(
            jax.ShapeDtypeStruct((N, H, W, Cout), jnp.bfloat16),
            jax.ShapeDtypeStruct((N, T, 1, Cout), jnp.float32),
            jax.ShapeDtypeStruct((N, T, 1, Cout), jnp.float32),
        ),
        grid_spec=pltpu.PrefetchScalarGridSpec(
            num_scalar_prefetch=0,
            grid=(N, T),
            in_specs=[
                # main row tile
                pl.BlockSpec((None, th, W, Cin), lambda n, t: (n, t, 0, 0)),
                # 1-row top halo (clamped at the image boundary)
                pl.BlockSpec((None, 1, W, Cin),
                             lambda n, t: (n, jnp.maximum(t * th - 1, 0), 0, 0)),
                # 1-row bottom halo (clamped at the image boundary)
                pl.BlockSpec((None, 1, W, Cin),
                             lambda n, t: (n, jnp.minimum(t * th + th, H - 1), 0, 0)),
                pl.BlockSpec((3, 3 * Cin, Cout), lambda n, t: (0, 0, 0)),
                pl.BlockSpec((1, Cin), lambda n, t: (0, 0)),
                pl.BlockSpec((1, Cin), lambda n, t: (0, 0)),
            ],
            out_specs=(
                pl.BlockSpec((None, th, W, Cout), lambda n, t: (n, t, 0, 0)),
                pl.BlockSpec((None, None, 1, Cout), lambda n, t: (n, t, 0, 0)),
                pl.BlockSpec((None, None, 1, Cout), lambda n, t: (n, t, 0, 0)),
            ),
            scratch_shapes=[pltpu.VMEM((th * W, Cout), jnp.float32)],
        ),
        compiler_params=pltpu.CompilerParams(
            dimension_semantics=("parallel", "parallel"),
            vmem_limit_bytes=VMEM_LIMIT),
    )(x, x, x, w, scale, shift)


# ---------------------------------------------------------------------------
# Final BatchNorm (precomputed scale/shift, bias folded in) + ReLU, row-tiled
# ---------------------------------------------------------------------------
def bn_relu_kernel(x_ref, scale_ref, shift_ref, o_ref):
    x = x_ref[...].astype(jnp.float32)
    o_ref[...] = jnp.maximum(x * scale_ref[...] + shift_ref[...],
                             0.0).astype(o_ref.dtype)


def bn_relu(x, scale, shift, th):
    N, H, W, C = x.shape
    T = H // th
    return pl.pallas_call(
        bn_relu_kernel,
        out_shape=jax.ShapeDtypeStruct((N, H, W, C), jnp.bfloat16),
        grid_spec=pltpu.PrefetchScalarGridSpec(
            num_scalar_prefetch=0,
            grid=(N, T),
            in_specs=[
                pl.BlockSpec((None, th, W, C), lambda n, t: (n, t, 0, 0)),
                pl.BlockSpec((1, C), lambda n, t: (0, 0)),
                pl.BlockSpec((1, C), lambda n, t: (0, 0)),
            ],
            out_specs=pl.BlockSpec((None, th, W, C), lambda n, t: (n, t, 0, 0)),
        ),
        compiler_params=pltpu.CompilerParams(
            dimension_semantics=("parallel", "parallel"),
            vmem_limit_bytes=VMEM_LIMIT),
    )(x, scale, shift)


# ---------------------------------------------------------------------------
# Host-side helpers
# ---------------------------------------------------------------------------
def _bn_scale_shift(mean_nt, ssd_nt, gamma, beta, bias, tile_count, is_batchnorm):
    # mean_nt / ssd_nt: (N, T, 1, C) per-tile stats of the *bias-free* conv
    # accumulator.  The conv bias cancels inside training-mode BatchNorm, so
    # with BN it is dropped; without BN it simply becomes the ReLU shift.
    if not is_batchnorm:
        return jnp.ones_like(bias), bias
    groups = mean_nt.shape[0] * mean_nt.shape[1]
    m = mean_nt.reshape(groups, -1)                              # (G, C)
    s = ssd_nt.reshape(groups, -1)
    mean = jnp.mean(m, axis=0, keepdims=True)                    # (1, C)
    ssd = (jnp.sum(s, axis=0, keepdims=True)
           + tile_count * jnp.sum((m - mean) ** 2, axis=0, keepdims=True))
    var = ssd / (groups * tile_count)            # biased, BN training mode
    scale = gamma / jnp.sqrt(var + EPS)
    shift = beta - mean * scale
    return scale, shift


def _pad_conv_w(w, cin_p, cout_p):
    # (3, 3, Cin, Cout) -> (3, 3*Cin_p, Cout_p) bf16, kh / kw-major / cin-minor
    kh, kw, cin, cout = w.shape
    wp = jnp.zeros((kh, kw, cin_p, cout_p), jnp.float32)
    wp = wp.at[:, :, :cin, :cout].set(w)
    return wp.reshape(kh, kw * cin_p, cout_p).astype(jnp.bfloat16)


def _pad_vec(v, c_p):
    return jnp.zeros((1, c_p), jnp.float32).at[0, :v.shape[0]].set(v)


# ---------------------------------------------------------------------------
# unetConv2 forward
# ---------------------------------------------------------------------------
@functools.partial(jax.jit, static_argnames=("is_batchnorm", "row_tile"))
def unet_conv2_forward(x_nchw, params, is_batchnorm=True, row_tile=None):
    # bf16 before the NCHW->NHWC relayout (halves the relayout HBM traffic).
    x = jnp.transpose(x_nchw.astype(jnp.bfloat16), (0, 2, 3, 1))
    N, H, W, Cin = x.shape
    Cout = params["w1"].shape[-1]
    cin_p, cout_p = _round_up(Cin), _round_up(Cout)
    # Channels padded to a lane multiple; no spatial padding (done in-kernel).
    x = jnp.pad(x, ((0, 0), (0, 0), (0, 0), (0, cin_p - Cin)))

    th = _pick_row_tile(H, W, cout_p) if row_tile is None else row_tile
    if H % th != 0:
        raise ValueError("row_tile must divide H")

    w1 = _pad_conv_w(params["w1"], cin_p, cout_p)
    w2 = _pad_conv_w(params["w2"], cout_p, cout_p)
    b1, b2 = _pad_vec(params["b1"], cout_p), _pad_vec(params["b2"], cout_p)
    g1, bt1 = _pad_vec(params["g1"], cout_p), _pad_vec(params["beta1"], cout_p)
    g2, bt2 = _pad_vec(params["g2"], cout_p), _pad_vec(params["beta2"], cout_p)

    one_in = jnp.ones((1, cin_p), jnp.float32)
    zero_in = jnp.zeros((1, cin_p), jnp.float32)

    # --- layer 1: conv + fused per-tile batch statistics -------------------
    y1, m1, s1 = conv_bn_stats(x, w1, one_in, zero_in, th, fuse_input=False)
    scale1, shift1 = _bn_scale_shift(m1, s1, g1, bt1, b1, th * W, is_batchnorm)

    # --- layer 2: (BN1 + ReLU fused into conv input) + conv + stats --------
    y2, m2, s2 = conv_bn_stats(y1, w2, scale1, shift1, th, fuse_input=True)
    scale2, shift2 = _bn_scale_shift(m2, s2, g2, bt2, b2, th * W, is_batchnorm)

    # --- final BN + ReLU (bf16 output, row-tiled) ---------------------------
    out = bn_relu(y2, scale2, shift2, th)                 # (N, H, W, Cout_p)
    return jnp.transpose(out[..., :Cout], (0, 3, 1, 2)).astype(jnp.float32)


# ---------------------------------------------------------------------------
# Parameter init (kaiming-like, mirrors init_weights(..., 'kaiming'))
# ---------------------------------------------------------------------------
def init_unet_conv2_params(key, in_size, out_size):
    k1, k2, k3, k4, k5, k6 = jax.random.split(key, 6)

    def kaiming(k, cin, cout):
        std = (2.0 / (9 * cin)) ** 0.5
        return std * jax.random.normal(k, (3, 3, cin, cout), jnp.float32)

    return dict(
        w1=kaiming(k1, in_size, out_size),
        b1=0.05 * jax.random.normal(k2, (out_size,), jnp.float32),
        g1=1.0 + 0.02 * jax.random.normal(k5, (out_size,), jnp.float32),
        beta1=jnp.zeros((out_size,), jnp.float32),
        w2=kaiming(k3, out_size, out_size),
        b2=0.05 * jax.random.normal(k4, (out_size,), jnp.float32),
        g2=1.0 + 0.02 * jax.random.normal(k6, (out_size,), jnp.float32),
        beta2=jnp.zeros((out_size,), jnp.float32),
    )


# ---------------------------------------------------------------------------
# Pure-JAX reference for correctness checking
# ---------------------------------------------------------------------------
def unet_conv2_ref(x_nchw, params, is_batchnorm=True):
    x = jnp.transpose(x_nchw, (0, 2, 3, 1)).astype(jnp.float32)

    def conv(h, w, b):
        y = jax.lax.conv_general_dilated(
            h, w, (1, 1), "SAME",
            dimension_numbers=("NHWC", "HWIO", "NHWC"))
        return y + b

    def bnr(h, g, bta):
        if is_batchnorm:
            m = jnp.mean(h, axis=(0, 1, 2))
            v = jnp.var(h, axis=(0, 1, 2))
            h = (h - m) / jnp.sqrt(v + EPS) * g + bta
        return jnp.maximum(h, 0.0)

    h = bnr(conv(x, params["w1"], params["b1"]), params["g1"], params["beta1"])
    h = bnr(conv(h, params["w2"], params["b2"]), params["g2"], params["beta2"])
    return jnp.transpose(h, (0, 3, 1, 2))


if __name__ == "__main__":
    key = jax.random.PRNGKey(0)
    kx, kp = jax.random.split(key)

    N, Cin, H, W = 2, 4, 16, 16
    Cout = 8
    x = jax.random.normal(kx, (N, Cin, H, W), jnp.float32)   # NCHW, like PyTorch
    params = init_unet_conv2_params(kp, Cin, Cout)

    # Multi-row-tile path (T = 4): exercises the halo loads, boundary-row
    # zeroing and the tile-combinable BatchNorm statistics.
    out = jax.block_until_ready(unet_conv2_forward(x, params, row_tile=4))
    ref = unet_conv2_ref(x, params)
    assert out.shape == (N, Cout, H, W)
    # bf16 activations/weights on the MXU (f32 accumulation) -> relaxed tol.
    assert jnp.allclose(out, ref, atol=5e-2, rtol=5e-2), float(
        jnp.max(jnp.abs(out - ref)))

    # Single-tile path without BatchNorm: exercises the bias folding.
    out2 = jax.block_until_ready(
        unet_conv2_forward(x, params, is_batchnorm=False))
    ref2 = unet_conv2_ref(x, params, is_batchnorm=False)
    assert jnp.allclose(out2, ref2, atol=5e-2, rtol=5e-2), float(
        jnp.max(jnp.abs(out2 - ref2)))

    print("KERNEL_OK")
</pallas_src>

<mosaic_0001>
module attributes {stable_mosaic.version = 11 : i64} {
  func.func @conv_bn_stats_kernel(%arg0: i32, %arg1: i32, %arg2: memref<1x4x16x128xbf16, #tpu.memory_space<vmem>>, %arg3: memref<1x1x16x128xbf16, #tpu.memory_space<vmem>>, %arg4: memref<1x1x16x128xbf16, #tpu.memory_space<vmem>>, %arg5: memref<3x384x128xbf16, #tpu.memory_space<vmem>>, %arg6: memref<1x128xf32, #tpu.memory_space<vmem>>, %arg7: memref<1x128xf32, #tpu.memory_space<vmem>>, %arg8: memref<1x4x16x128xbf16, #tpu.memory_space<vmem>>, %arg9: memref<1x1x1x128xf32, #tpu.memory_space<vmem>>, %arg10: memref<1x1x1x128xf32, #tpu.memory_space<vmem>>, %arg11: memref<64x128xf32, #tpu.memory_space<vmem>>) attributes {dimension_semantics = [#tpu.dimension_semantics<parallel>, #tpu.dimension_semantics<parallel>], iteration_bounds = array<i64: 2, 4>, scalar_prefetch = 0 : i64, scratch_operands = 1 : i64, tpu.core_type = #tpu.core_type<tc>, window_params = [{transform_indices = @transform_0, window_bounds = array<i64: 1, 4, 16, 128>}, {transform_indices = @transform_1, window_bounds = array<i64: 1, 1, 16, 128>}, {transform_indices = @transform_2, window_bounds = array<i64: 1, 1, 16, 128>}, {pipeline_mode = #tpu.pipeline_mode<synchronous>, transform_indices = @transform_3, window_bounds = array<i64: 3, 384, 128>}, {pipeline_mode = #tpu.pipeline_mode<synchronous>, transform_indices = @transform_4, window_bounds = array<i64: 1, 128>}, {pipeline_mode = #tpu.pipeline_mode<synchronous>, transform_indices = @transform_5, window_bounds = array<i64: 1, 128>}, {transform_indices = @transform_6, window_bounds = array<i64: 1, 4, 16, 128>}, {transform_indices = @transform_7, window_bounds = array<i64: 1, 1, 1, 128>}, {transform_indices = @transform_8, window_bounds = array<i64: 1, 1, 1, 128>}]} {
    %c0 = arith.constant 0 : index
    %c0_0 = arith.constant 0 : index
    %c0_1 = arith.constant 0 : index
    %c0_2 = arith.constant 0 : index
    %0 = vector.load %arg3[%c0, %c0_0, %c0_1, %c0_2] : memref<1x1x16x128xbf16, #tpu.memory_space<vmem>>, vector<1x1x16x128xbf16>
    %1 = vector.shape_cast %0 : vector<1x1x16x128xbf16> to vector<1x16x128xbf16>
    %c0_3 = arith.constant 0 : index
    %c0_4 = arith.constant 0 : index
    %c0_5 = arith.constant 0 : index
    %c0_6 = arith.constant 0 : index
    %2 = vector.load %arg2[%c0_3, %c0_4, %c0_5, %c0_6] : memref<1x4x16x128xbf16, #tpu.memory_space<vmem>>, vector<1x4x16x128xbf16>
    %3 = vector.shape_cast %2 : vector<1x4x16x128xbf16> to vector<4x16x128xbf16>
    %c0_7 = arith.constant 0 : index
    %c0_8 = arith.constant 0 : index
    %c0_9 = arith.constant 0 : index
    %c0_10 = arith.constant 0 : index
    %4 = vector.load %arg4[%c0_7, %c0_8, %c0_9, %c0_10] : memref<1x1x16x128xbf16, #tpu.memory_space<vmem>>, vector<1x1x16x128xbf16>
    %5 = vector.shape_cast %4 : vector<1x1x16x128xbf16> to vector<1x16x128xbf16>
    %c0_i32 = arith.constant 0 : i32
    %6 = arith.cmpi eq, %arg1, %c0_i32 : i32
    %cst = arith.constant 0.000000e+00 : bf16
    %7 = vector.broadcast %cst : bf16 to vector<1x16x128xbf16>
    %8 = arith.select %6, %7, %1 : vector<1x16x128xbf16>
    %c3_i32 = arith.constant 3 : i32
    %9 = arith.cmpi eq, %arg1, %c3_i32 : i32
    %cst_11 = arith.constant 0.000000e+00 : bf16
    %10 = vector.broadcast %cst_11 : bf16 to vector<1x16x128xbf16>
    %11 = arith.select %9, %10, %5 : vector<1x16x128xbf16>
    %12 = tpu.concatenate %8, %3, %11 in 0 : vector<1x16x128xbf16>, vector<4x16x128xbf16>, vector<1x16x128xbf16> -> vector<6x16x128xbf16>
    %cst_12 = arith.constant 0.000000e+00 : bf16
    %13 = vector.broadcast %cst_12 : bf16 to vector<6x1x128xbf16>
    %14 = vector.extract_strided_slice %12 {offsets = [0, 0, 0], sizes = [6, 15, 128], strides = [1, 1, 1]} : vector<6x16x128xbf16> to vector<6x15x128xbf16>
    %15 = tpu.concatenate %13, %14 in 1 : vector<6x1x128xbf16>, vector<6x15x128xbf16> -> vector<6x16x128xbf16>
    %16 = vector.extract_strided_slice %12 {offsets = [0, 1, 0], sizes = [6, 15, 128], strides = [1, 1, 1]} : vector<6x16x128xbf16> to vector<6x15x128xbf16>
    %17 = tpu.concatenate %16, %13 in 1 : vector<6x15x128xbf16>, vector<6x1x128xbf16> -> vector<6x16x128xbf16>
    %18 = tpu.concatenate %15, %12, %17 in 2 : vector<6x16x128xbf16>, vector<6x16x128xbf16>, vector<6x16x128xbf16> -> vector<6x16x384xbf16>
    %19 = vector.extract_strided_slice %18 {offsets = [0, 0, 0], sizes = [4, 16, 384], strides = [1, 1, 1]} : vector<6x16x384xbf16> to vector<4x16x384xbf16>
    %20 = vector.shape_cast %19 : vector<4x16x384xbf16> to vector<64x384xbf16>
    %c0_13 = arith.constant 0 : index
    %c0_14 = arith.constant 0 : index
    %c0_15 = arith.constant 0 : index
    %21 = vector.load %arg5[%c0_13, %c0_14, %c0_15] : memref<3x384x128xbf16, #tpu.memory_space<vmem>>, vector<1x384x128xbf16>
    %22 = vector.shape_cast %21 : vector<1x384x128xbf16> to vector<384x128xbf16>
    %cst_16 = arith.constant dense<0.000000e+00> : vector<64x128xf32>
    %23 = tpu.matmul %20, %22, %cst_16 {dimension_numbers = #tpu.dot_dimension_numbers<[1], [0], [0], [1], [0, 0, 1, 1], [], []>} : vector<64x384xbf16>, vector<384x128xbf16>, vector<64x128xf32> -> vector<64x128xf32>
    %c0_17 = arith.constant 0 : index
    %c0_18 = arith.constant 0 : index
    %24 = vector.load %arg11[%c0_17, %c0_18] : memref<64x128xf32, #tpu.memory_space<vmem>>, vector<64x128xf32>
    tpu.vector_store %arg11[%c0_17, %c0_18], %23 {strides = array<i32>} : memref<64x128xf32, #tpu.memory_space<vmem>>, vector<64x128xf32>,
    %c0_19 = arith.constant 0 : index
    %c0_20 = arith.constant 0 : index
    %25 = vector.load %arg11[%c0_19, %c0_20] : memref<64x128xf32, #tpu.memory_space<vmem>>, vector<64x128xf32>
    %26 = vector.extract_strided_slice %18 {offsets = [1, 0, 0], sizes = [4, 16, 384], strides = [1, 1, 1]} : vector<6x16x384xbf16> to vector<4x16x384xbf16>
    %27 = vector.shape_cast %26 : vector<4x16x384xbf16> to vector<64x384xbf16>
    %c1 = arith.constant 1 : index
    %c0_21 = arith.constant 0 : index
    %c0_22 = arith.constant 0 : index
    %28 = vector.load %arg5[%c1, %c0_21, %c0_22] : memref<3x384x128xbf16, #tpu.memory_space<vmem>>, vector<1x384x128xbf16>
    %29 = vector.shape_cast %28 : vector<1x384x128xbf16> to vector<384x128xbf16>
    %cst_23 = arith.constant dense<0.000000e+00> : vector<64x128xf32>
    %30 = tpu.matmul %27, %29, %cst_23 {dimension_numbers = #tpu.dot_dimension_numbers<[1], [0], [0], [1], [0, 0, 1, 1], [], []>} : vector<64x384xbf16>, vector<384x128xbf16>, vector<64x128xf32> -> vector<64x128xf32>
    %31 = arith.addf %25, %30 : vector<64x128xf32>
    %c0_24 = arith.constant 0 : index
    %c0_25 = arith.constant 0 : index
    %32 = vector.load %arg11[%c0_24, %c0_25] : memref<64x128xf32, #tpu.memory_space<vmem>>, vector<64x128xf32>
    tpu.vector_store %arg11[%c0_24, %c0_25], %31 {strides = array<i32>} : memref<64x128xf32, #tpu.memory_space<vmem>>, vector<64x128xf32>,
    %c0_26 = arith.constant 0 : index
    %c0_27 = arith.constant 0 : index
    %33 = vector.load %arg11[%c0_26, %c0_27] : memref<64x128xf32, #tpu.memory_space<vmem>>, vector<64x128xf32>
    %34 = vector.extract_strided_slice %18 {offsets = [2, 0, 0], sizes = [4, 16, 384], strides = [1, 1, 1]} : vector<6x16x384xbf16> to vector<4x16x384xbf16>
    %35 = vector.shape_cast %34 : vector<4x16x384xbf16> to vector<64x384xbf16>
    %c2 = arith.constant 2 : index
    %c0_28 = arith.constant 0 : index
    %c0_29 = arith.constant 0 : index
    %36 = vector.load %arg5[%c2, %c0_28, %c0_29] : memref<3x384x128xbf16, #tpu.memory_space<vmem>>, vector<1x384x128xbf16>
    %37 = vector.shape_cast %36 : vector<1x384x128xbf16> to vector<384x128xbf16>
    %cst_30 = arith.constant dense<0.000000e+00> : vector<64x128xf32>
    %38 = tpu.matmul %35, %37, %cst_30 {dimension_numbers = #tpu.dot_dimension_numbers<[1], [0], [0], [1], [0, 0, 1, 1], [], []>} : vector<64x384xbf16>, vector<384x128xbf16>, vector<64x128xf32> -> vector<64x128xf32>
    %39 = arith.addf %33, %38 : vector<64x128xf32>
    %c0_31 = arith.constant 0 : index
    %c0_32 = arith.constant 0 : index
    %40 = vector.load %arg11[%c0_31, %c0_32] : memref<64x128xf32, #tpu.memory_space<vmem>>, vector<64x128xf32>
    tpu.vector_store %arg11[%c0_31, %c0_32], %39 {strides = array<i32>} : memref<64x128xf32, #tpu.memory_space<vmem>>, vector<64x128xf32>,
    %c0_33 = arith.constant 0 : index
    %c0_34 = arith.constant 0 : index
    %41 = vector.load %arg11[%c0_33, %c0_34] : memref<64x128xf32, #tpu.memory_space<vmem>>, vector<64x128xf32>
    %42 = vector.shape_cast %41 : vector<64x128xf32> to vector<4x16x128xf32>
    %43 = arith.truncf %42 : vector<4x16x128xf32> to vector<4x16x128xbf16>
    %c0_35 = arith.constant 0 : index
    %c0_36 = arith.constant 0 : index
    %c0_37 = arith.constant 0 : index
    %c0_38 = arith.constant 0 : index
    %44 = vector.load %arg8[%c0_35, %c0_36, %c0_37, %c0_38] : memref<1x4x16x128xbf16, #tpu.memory_space<vmem>>, vector<1x4x16x128xbf16>
    %45 = vector.shape_cast %44 : vector<1x4x16x128xbf16> to vector<4x16x128xbf16>
    %46 = vector.shape_cast %43 : vector<4x16x128xbf16> to vector<1x4x16x128xbf16>
    tpu.vector_store %arg8[%c0_35, %c0_36, %c0_37, %c0_38], %46 {strides = array<i32>} : memref<1x4x16x128xbf16, #tpu.memory_space<vmem>>, vector<1x4x16x128xbf16>,
    %cst_39 = arith.constant dense<0.000000e+00> : vector<128xf32>
    %47 = vector.multi_reduction <add>, %41, %cst_39 [0] : vector<64x128xf32> to vector<128xf32>
    %48 = vector.shape_cast %47 : vector<128xf32> to vector<1x128xf32>
    %cst_40 = arith.constant 1.562500e-02 : f32
    %49 = vector.broadcast %cst_40 : f32 to vector<1x128xf32>
    %50 = arith.mulf %48, %49 : vector<1x128xf32>
    %51 = vector.broadcast %50 : vector<1x128xf32> to vector<64x128xf32>
    %52 = arith.subf %41, %51 : vector<64x128xf32>
    %c0_41 = arith.constant 0 : index
    %c0_42 = arith.constant 0 : index
    %c0_43 = arith.constant 0 : index
    %c0_44 = arith.constant 0 : index
    %53 = vector.load %arg9[%c0_41, %c0_42, %c0_43, %c0_44] : memref<1x1x1x128xf32, #tpu.memory_space<vmem>>, vector<1x1x1x128xf32>
    %54 = vector.shape_cast %53 : vector<1x1x1x128xf32> to vector<1x128xf32>
    %55 = vector.shape_cast %50 : vector<1x128xf32> to vector<1x1x1x128xf32>
    tpu.vector_store %arg9[%c0_41, %c0_42, %c0_43, %c0_44], %55 {strides = array<i32>} : memref<1x1x1x128xf32, #tpu.memory_space<vmem>>, vector<1x1x1x128xf32>,
    %56 = arith.mulf %52, %52 : vector<64x128xf32>
    %cst_45 = arith.constant dense<0.000000e+00> : vector<128xf32>
    %57 = vector.multi_reduction <add>, %56, %cst_45 [0] : vector<64x128xf32> to vector<128xf32>
    %58 = vector.shape_cast %57 : vector<128xf32> to vector<1x128xf32>
    %c0_46 = arith.constant 0 : index
    %c0_47 = arith.constant 0 : index
    %c0_48 = arith.constant 0 : index
    %c0_49 = arith.constant 0 : index
    %59 = vector.load %arg10[%c0_46, %c0_47, %c0_48, %c0_49] : memref<1x1x1x128xf32, #tpu.memory_space<vmem>>, vector<1x1x1x128xf32>
    %60 = vector.shape_cast %59 : vector<1x1x1x128xf32> to vector<1x128xf32>
    %61 = vector.shape_cast %58 : vector<1x128xf32> to vector<1x1x1x128xf32>
    tpu.vector_store %arg10[%c0_46, %c0_47, %c0_48, %c0_49], %61 {strides = array<i32>} : memref<1x1x1x128xf32, #tpu.memory_space<vmem>>, vector<1x1x1x128xf32>,
    return
  }
  func.func @transform_0(%arg0: i32, %arg1: i32) -> (i32, i32, i32, i32) {
    %c0_i32 = arith.constant 0 : i32
    %c0_i32_0 = arith.constant 0 : i32
    %c0_i32_1 = arith.constant 0 : i32
    return %arg0, %arg1, %c0_i32, %c0_i32_0 : i32, i32, i32, i32
  }
  func.func @transform_1(%arg0: i32, %arg1: i32) -> (i32, i32, i32, i32) {
    %c4_i32 = arith.constant 4 : i32
    %0 = arith.muli %arg1, %c4_i32 : i32
    %c1_i32 = arith.constant 1 : i32
    %1 = arith.subi %0, %c1_i32 : i32
    %c0_i32 = arith.constant 0 : i32
    %2 = arith.maxsi %1, %c0_i32 : i32
    %c0_i32_0 = arith.constant 0 : i32
    %c0_i32_1 = arith.constant 0 : i32
    %c0_i32_2 = arith.constant 0 : i32
    return %arg0, %2, %c0_i32_0, %c0_i32_1 : i32, i32, i32, i32
  }
  func.func @transform_2(%arg0: i32, %arg1: i32) -> (i32, i32, i32, i32) {
    %c4_i32 = arith.constant 4 : i32
    %0 = arith.muli %arg1, %c4_i32 : i32
    %c4_i32_0 = arith.constant 4 : i32
    %1 = arith.addi %0, %c4_i32_0 : i32
    %c15_i32 = arith.constant 15 : i32
    %2 = arith.minsi %1, %c15_i32 : i32
    %c0_i32 = arith.constant 0 : i32
    %c0_i32_1 = arith.constant 0 : i32
    %c0_i32_2 = arith.constant 0 : i32
    return %arg0, %2, %c0_i32, %c0_i32_1 : i32, i32, i32, i32
  }
  func.func @transform_3(%arg0: i32, %arg1: i32) -> (i32, i32, i32) {
    %c0_i32 = arith.constant 0 : i32
    %c0_i32_0 = arith.constant 0 : i32
    %c0_i32_1 = arith.constant 0 : i32
    %c0_i32_2 = arith.constant 0 : i32
    return %c0_i32, %c0_i32_0, %c0_i32_1 : i32, i32, i32
  }
  func.func @transform_4(%arg0: i32, %arg1: i32) -> (i32, i32) {
    %c0_i32 = arith.constant 0 : i32
    %c0_i32_0 = arith.constant 0 : i32
    %c0_i32_1 = arith.constant 0 : i32
    return %c0_i32, %c0_i32_0 : i32, i32
  }
  func.func @transform_5(%arg0: i32, %arg1: i32) -> (i32, i32) {
    %c0_i32 = arith.constant 0 : i32
    %c0_i32_0 = arith.constant 0 : i32
    %c0_i32_1 = arith.constant 0 : i32
    return %c0_i32, %c0_i32_0 : i32, i32
  }
  func.func @transform_6(%arg0: i32, %arg1: i32) -> (i32, i32, i32, i32) {
    %c0_i32 = arith.constant 0 : i32
    %c0_i32_0 = arith.constant 0 : i32
    %c0_i32_1 = arith.constant 0 : i32
    return %arg0, %arg1, %c0_i32, %c0_i32_0 : i32, i32, i32, i32
  }
  func.func @transform_7(%arg0: i32, %arg1: i32) -> (i32, i32, i32, i32) {
    %c0_i32 = arith.constant 0 : i32
    %c0_i32_0 = arith.constant 0 : i32
    %c0_i32_1 = arith.constant 0 : i32
    return %arg0, %arg1, %c0_i32, %c0_i32_0 : i32, i32, i32, i32
  }
  func.func @transform_8(%arg0: i32, %arg1: i32) -> (i32, i32, i32, i32) {
    %c0_i32 = arith.constant 0 : i32
    %c0_i32_0 = arith.constant 0 : i32
    %c0_i32_1 = arith.constant 0 : i32
    return %arg0, %arg1, %c0_i32, %c0_i32_0 : i32, i32, i32, i32
  }
}

module attributes {stable_mosaic.version = 11 : i64} {
  func.func @bn_relu_kernel(%arg0: i32, %arg1: i32, %arg2: memref<1x4x16x128xbf16, #tpu.memory_space<vmem>>, %arg3: memref<1x128xf32, #tpu.memory_space<vmem>>, %arg4: memref<1x128xf32, #tpu.memory_space<vmem>>, %arg5: memref<1x4x16x128xbf16, #tpu.memory_space<vmem>>) attributes {dimension_semantics = [#tpu.dimension_semantics<parallel>, #tpu.dimension_semantics<parallel>], iteration_bounds = array<i64: 2, 4>, scalar_prefetch = 0 : i64, scratch_operands = 0 : i64, tpu.core_type = #tpu.core_type<tc>, window_params = [{transform_indices = @transform_0, window_bounds = array<i64: 1, 4, 16, 128>}, {pipeline_mode = #tpu.pipeline_mode<synchronous>, transform_indices = @transform_1, window_bounds = array<i64: 1, 128>}, {pipeline_mode = #tpu.pipeline_mode<synchronous>, transform_indices = @transform_2, window_bounds = array<i64: 1, 128>}, {transform_indices = @transform_3, window_bounds = array<i64: 1, 4, 16, 128>}]} {
    %c0 = arith.constant 0 : index
    %c0_0 = arith.constant 0 : index
    %c0_1 = arith.constant 0 : index
    %c0_2 = arith.constant 0 : index
    %0 = vector.load %arg2[%c0, %c0_0, %c0_1, %c0_2] : memref<1x4x16x128xbf16, #tpu.memory_space<vmem>>, vector<1x4x16x128xbf16>
    %1 = vector.shape_cast %0 : vector<1x4x16x128xbf16> to vector<4x16x128xbf16>
    %2 = arith.extf %1 : vector<4x16x128xbf16> to vector<4x16x128xf32>
    %c0_3 = arith.constant 0 : index
    %c0_4 = arith.constant 0 : index
    %3 = vector.load %arg3[%c0_3, %c0_4] : memref<1x128xf32, #tpu.memory_space<vmem>>, vector<1x128xf32>
    %4 = vector.shape_cast %3 : vector<1x128xf32> to vector<1x1x128xf32>
    %5 = vector.broadcast %4 : vector<1x1x128xf32> to vector<4x16x128xf32>
    %6 = arith.mulf %2, %5 : vector<4x16x128xf32>
    %c0_5 = arith.constant 0 : index
    %c0_6 = arith.constant 0 : index
    %7 = vector.load %arg4[%c0_5, %c0_6] : memref<1x128xf32, #tpu.memory_space<vmem>>, vector<1x128xf32>
    %8 = vector.shape_cast %7 : vector<1x128xf32> to vector<1x1x128xf32>
    %9 = vector.broadcast %8 : vector<1x1x128xf32> to vector<4x16x128xf32>
    %10 = arith.addf %6, %9 : vector<4x16x128xf32>
    %cst = arith.constant 0.000000e+00 : f32
    %11 = vector.broadcast %cst : f32 to vector<4x16x128xf32>
    %12 = arith.maximumf %10, %11 : vector<4x16x128xf32>
    %13 = arith.truncf %12 : vector<4x16x128xf32> to vector<4x16x128xbf16>
    %c0_7 = arith.constant 0 : index
    %c0_8 = arith.constant 0 : index
    %c0_9 = arith.constant 0 : index
    %c0_10 = arith.constant 0 : index
    %14 = vector.load %arg5[%c0_7, %c0_8, %c0_9, %c0_10] : memref<1x4x16x128xbf16, #tpu.memory_space<vmem>>, vector<1x4x16x128xbf16>
    %15 = vector.shape_cast %14 : vector<1x4x16x128xbf16> to vector<4x16x128xbf16>
    %16 = vector.shape_cast %13 : vector<4x16x128xbf16> to vector<1x4x16x128xbf16>
    tpu.vector_store %arg5[%c0_7, %c0_8, %c0_9, %c0_10], %16 {strides = array<i32>} : memref<1x4x16x128xbf16, #tpu.memory_space<vmem>>, vector<1x4x16x128xbf16>,
    return
  }
  func.func @transform_0(%arg0: i32, %arg1: i32) -> (i32, i32, i32, i32) {
    %c0_i32 = arith.constant 0 : i32
    %c0_i32_0 = arith.constant 0 : i32
    %c0_i32_1 = arith.constant 0 : i32
    return %arg0, %arg1, %c0_i32, %c0_i32_0 : i32, i32, i32, i32
  }
  func.func @transform_1(%arg0: i32, %arg1: i32) -> (i32, i32) {
    %c0_i32 = arith.constant 0 : i32
    %c0_i32_0 = arith.constant 0 : i32
    %c0_i32_1 = arith.constant 0 : i32
    return %c0_i32, %c0_i32_0 : i32, i32
  }
  func.func @transform_2(%arg0: i32, %arg1: i32) -> (i32, i32) {
    %c0_i32 = arith.constant 0 : i32
    %c0_i32_0 = arith.constant 0 : i32
    %c0_i32_1 = arith.constant 0 : i32
    return %c0_i32, %c0_i32_0 : i32, i32
  }
  func.func @transform_3(%arg0: i32, %arg1: i32) -> (i32, i32, i32, i32) {
    %c0_i32 = arith.constant 0 : i32
    %c0_i32_0 = arith.constant 0 : i32
    %c0_i32_1 = arith.constant 0 : i32
    return %arg0, %arg1, %c0_i32, %c0_i32_0 : i32, i32, i32, i32
  }
}

module attributes {stable_mosaic.version = 11 : i64} {
  func.func @conv_bn_stats_kernel(%arg0: i32, %arg1: i32, %arg2: memref<1x4x16x128xbf16, #tpu.memory_space<vmem>>, %arg3: memref<1x1x16x128xbf16, #tpu.memory_space<vmem>>, %arg4: memref<1x1x16x128xbf16, #tpu.memory_space<vmem>>, %arg5: memref<3x384x128xbf16, #tpu.memory_space<vmem>>, %arg6: memref<1x128xf32, #tpu.memory_space<vmem>>, %arg7: memref<1x128xf32, #tpu.memory_space<vmem>>, %arg8: memref<1x4x16x128xbf16, #tpu.memory_space<vmem>>, %arg9: memref<1x1x1x128xf32, #tpu.memory_space<vmem>>, %arg10: memref<1x1x1x128xf32, #tpu.memory_space<vmem>>, %arg11: memref<64x128xf32, #tpu.memory_space<vmem>>) attributes {dimension_semantics = [#tpu.dimension_semantics<parallel>, #tpu.dimension_semantics<parallel>], iteration_bounds = array<i64: 2, 4>, scalar_prefetch = 0 : i64, scratch_operands = 1 : i64, tpu.core_type = #tpu.core_type<tc>, window_params = [{transform_indices = @transform_0, window_bounds = array<i64: 1, 4, 16, 128>}, {transform_indices = @transform_1, window_bounds = array<i64: 1, 1, 16, 128>}, {transform_indices = @transform_2, window_bounds = array<i64: 1, 1, 16, 128>}, {pipeline_mode = #tpu.pipeline_mode<synchronous>, transform_indices = @transform_3, window_bounds = array<i64: 3, 384, 128>}, {pipeline_mode = #tpu.pipeline_mode<synchronous>, transform_indices = @transform_4, window_bounds = array<i64: 1, 128>}, {pipeline_mode = #tpu.pipeline_mode<synchronous>, transform_indices = @transform_5, window_bounds = array<i64: 1, 128>}, {transform_indices = @transform_6, window_bounds = array<i64: 1, 4, 16, 128>}, {transform_indices = @transform_7, window_bounds = array<i64: 1, 1, 1, 128>}, {transform_indices = @transform_8, window_bounds = array<i64: 1, 1, 1, 128>}]} {
    %c0 = arith.constant 0 : index
    %c0_0 = arith.constant 0 : index
    %c0_1 = arith.constant 0 : index
    %c0_2 = arith.constant 0 : index
    %0 = vector.load %arg3[%c0, %c0_0, %c0_1, %c0_2] : memref<1x1x16x128xbf16, #tpu.memory_space<vmem>>, vector<1x1x16x128xbf16>
    %1 = vector.shape_cast %0 : vector<1x1x16x128xbf16> to vector<1x16x128xbf16>
    %c0_3 = arith.constant 0 : index
    %c0_4 = arith.constant 0 : index
    %c0_5 = arith.constant 0 : index
    %c0_6 = arith.constant 0 : index
    %2 = vector.load %arg2[%c0_3, %c0_4, %c0_5, %c0_6] : memref<1x4x16x128xbf16, #tpu.memory_space<vmem>>, vector<1x4x16x128xbf16>
    %3 = vector.shape_cast %2 : vector<1x4x16x128xbf16> to vector<4x16x128xbf16>
    %c0_7 = arith.constant 0 : index
    %c0_8 = arith.constant 0 : index
    %c0_9 = arith.constant 0 : index
    %c0_10 = arith.constant 0 : index
    %4 = vector.load %arg4[%c0_7, %c0_8, %c0_9, %c0_10] : memref<1x1x16x128xbf16, #tpu.memory_space<vmem>>, vector<1x1x16x128xbf16>
    %5 = vector.shape_cast %4 : vector<1x1x16x128xbf16> to vector<1x16x128xbf16>
    %c0_11 = arith.constant 0 : index
    %c0_12 = arith.constant 0 : index
    %6 = vector.load %arg6[%c0_11, %c0_12] : memref<1x128xf32, #tpu.memory_space<vmem>>, vector<1x128xf32>
    %c0_13 = arith.constant 0 : index
    %c0_14 = arith.constant 0 : index
    %7 = vector.load %arg7[%c0_13, %c0_14] : memref<1x128xf32, #tpu.memory_space<vmem>>, vector<1x128xf32>
    %8 = arith.extf %1 : vector<1x16x128xbf16> to vector<1x16x128xf32>
    %9 = vector.shape_cast %6 : vector<1x128xf32> to vector<1x1x128xf32>
    %10 = vector.broadcast %9 : vector<1x1x128xf32> to vector<1x16x128xf32>
    %11 = arith.mulf %8, %10 : vector<1x16x128xf32>
    %12 = vector.shape_cast %7 : vector<1x128xf32> to vector<1x1x128xf32>
    %13 = vector.broadcast %12 : vector<1x1x128xf32> to vector<1x16x128xf32>
    %14 = arith.addf %11, %13 : vector<1x16x128xf32>
    %cst = arith.constant 0.000000e+00 : f32
    %15 = vector.broadcast %cst : f32 to vector<1x16x128xf32>
    %16 = arith.maximumf %14, %15 : vector<1x16x128xf32>
    %17 = arith.truncf %16 : vector<1x16x128xf32> to vector<1x16x128xbf16>
    %18 = arith.extf %3 : vector<4x16x128xbf16> to vector<4x16x128xf32>
    %19 = vector.shape_cast %6 : vector<1x128xf32> to vector<1x1x128xf32>
    %20 = vector.broadcast %19 : vector<1x1x128xf32> to vector<4x16x128xf32>
    %21 = arith.mulf %18, %20 : vector<4x16x128xf32>
    %22 = vector.shape_cast %7 : vector<1x128xf32> to vector<1x1x128xf32>
    %23 = vector.broadcast %22 : vector<1x1x128xf32> to vector<4x16x128xf32>
    %24 = arith.addf %21, %23 : vector<4x16x128xf32>
    %cst_15 = arith.constant 0.000000e+00 : f32
    %25 = vector.broadcast %cst_15 : f32 to vector<4x16x128xf32>
    %26 = arith.maximumf %24, %25 : vector<4x16x128xf32>
    %27 = arith.truncf %26 : vector<4x16x128xf32> to vector<4x16x128xbf16>
    %28 = arith.extf %5 : vector<1x16x128xbf16> to vector<1x16x128xf32>
    %29 = vector.shape_cast %6 : vector<1x128xf32> to vector<1x1x128xf32>
    %30 = vector.broadcast %29 : vector<1x1x128xf32> to vector<1x16x128xf32>
    %31 = arith.mulf %28, %30 : vector<1x16x128xf32>
    %32 = vector.shape_cast %7 : vector<1x128xf32> to vector<1x1x128xf32>
    %33 = vector.broadcast %32 : vector<1x1x128xf32> to vector<1x16x128xf32>
    %34 = arith.addf %31, %33 : vector<1x16x128xf32>
    %cst_16 = arith.constant 0.000000e+00 : f32
    %35 = vector.broadcast %cst_16 : f32 to vector<1x16x128xf32>
    %36 = arith.maximumf %34, %35 : vector<1x16x128xf32>
    %37 = arith.truncf %36 : vector<1x16x128xf32> to vector<1x16x128xbf16>
    %c0_i32 = arith.constant 0 : i32
    %38 = arith.cmpi eq, %arg1, %c0_i32 : i32
    %cst_17 = arith.constant 0.000000e+00 : bf16
    %39 = vector.broadcast %cst_17 : bf16 to vector<1x16x128xbf16>
    %40 = arith.select %38, %39, %17 : vector<1x16x128xbf16>
    %c3_i32 = arith.constant 3 : i32
    %41 = arith.cmpi eq, %arg1, %c3_i32 : i32
    %cst_18 = arith.constant 0.000000e+00 : bf16
    %42 = vector.broadcast %cst_18 : bf16 to vector<1x16x128xbf16>
    %43 = arith.select %41, %42, %37 : vector<1x16x128xbf16>
    %44 = tpu.concatenate %40, %27, %43 in 0 : vector<1x16x128xbf16>, vector<4x16x128xbf16>, vector<1x16x128xbf16> -> vector<6x16x128xbf16>
    %cst_19 = arith.constant 0.000000e+00 : bf16
    %45 = vector.broadcast %cst_19 : bf16 to vector<6x1x128xbf16>
    %46 = vector.extract_strided_slice %44 {offsets = [0, 0, 0], sizes = [6, 15, 128], strides = [1, 1, 1]} : vector<6x16x128xbf16> to vector<6x15x128xbf16>
    %47 = tpu.concatenate %45, %46 in 1 : vector<6x1x128xbf16>, vector<6x15x128xbf16> -> vector<6x16x128xbf16>
    %48 = vector.extract_strided_slice %44 {offsets = [0, 1, 0], sizes = [6, 15, 128], strides = [1, 1, 1]} : vector<6x16x128xbf16> to vector<6x15x128xbf16>
    %49 = tpu.concatenate %48, %45 in 1 : vector<6x15x128xbf16>, vector<6x1x128xbf16> -> vector<6x16x128xbf16>
    %50 = tpu.concatenate %47, %44, %49 in 2 : vector<6x16x128xbf16>, vector<6x16x128xbf16>, vector<6x16x128xbf16> -> vector<6x16x384xbf16>
    %51 = vector.extract_strided_slice %50 {offsets = [0, 0, 0], sizes = [4, 16, 384], strides = [1, 1, 1]} : vector<6x16x384xbf16> to vector<4x16x384xbf16>
    %52 = vector.shape_cast %51 : vector<4x16x384xbf16> to vector<64x384xbf16>
    %c0_20 = arith.constant 0 : index
    %c0_21 = arith.constant 0 : index
    %c0_22 = arith.constant 0 : index
    %53 = vector.load %arg5[%c0_20, %c0_21, %c0_22] : memref<3x384x128xbf16, #tpu.memory_space<vmem>>, vector<1x384x128xbf16>
    %54 = vector.shape_cast %53 : vector<1x384x128xbf16> to vector<384x128xbf16>
    %cst_23 = arith.constant dense<0.000000e+00> : vector<64x128xf32>
    %55 = tpu.matmul %52, %54, %cst_23 {dimension_numbers = #tpu.dot_dimension_numbers<[1], [0], [0], [1], [0, 0, 1, 1], [], []>} : vector<64x384xbf16>, vector<384x128xbf16>, vector<64x128xf32> -> vector<64x128xf32>
    %c0_24 = arith.constant 0 : index
    %c0_25 = arith.constant 0 : index
    %56 = vector.load %arg11[%c0_24, %c0_25] : memref<64x128xf32, #tpu.memory_space<vmem>>, vector<64x128xf32>
    tpu.vector_store %arg11[%c0_24, %c0_25], %55 {strides = array<i32>} : memref<64x128xf32, #tpu.memory_space<vmem>>, vector<64x128xf32>,
    %c0_26 = arith.constant 0 : index
    %c0_27 = arith.constant 0 : index
    %57 = vector.load %arg11[%c0_26, %c0_27] : memref<64x128xf32, #tpu.memory_space<vmem>>, vector<64x128xf32>
    %58 = vector.extract_strided_slice %50 {offsets = [1, 0, 0], sizes = [4, 16, 384], strides = [1, 1, 1]} : vector<6x16x384xbf16> to vector<4x16x384xbf16>
    %59 = vector.shape_cast %58 : vector<4x16x384xbf16> to vector<64x384xbf16>
    %c1 = arith.constant 1 : index
    %c0_28 = arith.constant 0 : index
    %c0_29 = arith.constant 0 : index
    %60 = vector.load %arg5[%c1, %c0_28, %c0_29] : memref<3x384x128xbf16, #tpu.memory_space<vmem>>, vector<1x384x128xbf16>
    %61 = vector.shape_cast %60 : vector<1x384x128xbf16> to vector<384x128xbf16>
    %cst_30 = arith.constant dense<0.000000e+00> : vector<64x128xf32>
    %62 = tpu.matmul %59, %61, %cst_30 {dimension_numbers = #tpu.dot_dimension_numbers<[1], [0], [0], [1], [0, 0, 1, 1], [], []>} : vector<64x384xbf16>, vector<384x128xbf16>, vector<64x128xf32> -> vector<64x128xf32>
    %63 = arith.addf %57, %62 : vector<64x128xf32>
    %c0_31 = arith.constant 0 : index
    %c0_32 = arith.constant 0 : index
    %64 = vector.load %arg11[%c0_31, %c0_32] : memref<64x128xf32, #tpu.memory_space<vmem>>, vector<64x128xf32>
    tpu.vector_store %arg11[%c0_31, %c0_32], %63 {strides = array<i32>} : memref<64x128xf32, #tpu.memory_space<vmem>>, vector<64x128xf32>,
    %c0_33 = arith.constant 0 : index
    %c0_34 = arith.constant 0 : index
    %65 = vector.load %arg11[%c0_33, %c0_34] : memref<64x128xf32, #tpu.memory_space<vmem>>, vector<64x128xf32>
    %66 = vector.extract_strided_slice %50 {offsets = [2, 0, 0], sizes = [4, 16, 384], strides = [1, 1, 1]} : vector<6x16x384xbf16> to vector<4x16x384xbf16>
    %67 = vector.shape_cast %66 : vector<4x16x384xbf16> to vector<64x384xbf16>
    %c2 = arith.constant 2 : index
    %c0_35 = arith.constant 0 : index
    %c0_36 = arith.constant 0 : index
    %68 = vector.load %arg5[%c2, %c0_35, %c0_36] : memref<3x384x128xbf16, #tpu.memory_space<vmem>>, vector<1x384x128xbf16>
    %69 = vector.shape_cast %68 : vector<1x384x128xbf16> to vector<384x128xbf16>
    %cst_37 = arith.constant dense<0.000000e+00> : vector<64x128xf32>
    %70 = tpu.matmul %67, %69, %cst_37 {dimension_numbers = #tpu.dot_dimension_numbers<[1], [0], [0], [1], [0, 0, 1, 1], [], []>} : vector<64x384xbf16>, vector<384x128xbf16>, vector<64x128xf32> -> vector<64x128xf32>
    %71 = arith.addf %65, %70 : vector<64x128xf32>
    %c0_38 = arith.constant 0 : index
    %c0_39 = arith.constant 0 : index
    %72 = vector.load %arg11[%c0_38, %c0_39] : memref<64x128xf32, #tpu.memory_space<vmem>>, vector<64x128xf32>
    tpu.vector_store %arg11[%c0_38, %c0_39], %71 {strides = array<i32>} : memref<64x128xf32, #tpu.memory_space<vmem>>, vector<64x128xf32>,
    %c0_40 = arith.constant 0 : index
    %c0_41 = arith.constant 0 : index
    %73 = vector.load %arg11[%c0_40, %c0_41] : memref<64x128xf32, #tpu.memory_space<vmem>>, vector<64x128xf32>
    %74 = vector.shape_cast %73 : vector<64x128xf32> to vector<4x16x128xf32>
    %75 = arith.truncf %74 : vector<4x16x128xf32> to vector<4x16x128xbf16>
    %c0_42 = arith.constant 0 : index
    %c0_43 = arith.constant 0 : index
    %c0_44 = arith.constant 0 : index
    %c0_45 = arith.constant 0 : index
    %76 = vector.load %arg8[%c0_42, %c0_43, %c0_44, %c0_45] : memref<1x4x16x128xbf16, #tpu.memory_space<vmem>>, vector<1x4x16x128xbf16>
    %77 = vector.shape_cast %76 : vector<1x4x16x128xbf16> to vector<4x16x128xbf16>
    %78 = vector.shape_cast %75 : vector<4x16x128xbf16> to vector<1x4x16x128xbf16>
    tpu.vector_store %arg8[%c0_42, %c0_43, %c0_44, %c0_45], %78 {strides = array<i32>} : memref<1x4x16x128xbf16, #tpu.memory_space<vmem>>, vector<1x4x16x128xbf16>,
    %cst_46 = arith.constant dense<0.000000e+00> : vector<128xf32>
    %79 = vector.multi_reduction <add>, %73, %cst_46 [0] : vector<64x128xf32> to vector<128xf32>
    %80 = vector.shape_cast %79 : vector<128xf32> to vector<1x128xf32>
    %cst_47 = arith.constant 1.562500e-02 : f32
    %81 = vector.broadcast %cst_47 : f32 to vector<1x128xf32>
    %82 = arith.mulf %80, %81 : vector<1x128xf32>
    %83 = vector.broadcast %82 : vector<1x128xf32> to vector<64x128xf32>
    %84 = arith.subf %73, %83 : vector<64x128xf32>
    %c0_48 = arith.constant 0 : index
    %c0_49 = arith.constant 0 : index
    %c0_50 = arith.constant 0 : index
    %c0_51 = arith.constant 0 : index
    %85 = vector.load %arg9[%c0_48, %c0_49, %c0_50, %c0_51] : memref<1x1x1x128xf32, #tpu.memory_space<vmem>>, vector<1x1x1x128xf32>
    %86 = vector.shape_cast %85 : vector<1x1x1x128xf32> to vector<1x128xf32>
    %87 = vector.shape_cast %82 : vector<1x128xf32> to vector<1x1x1x128xf32>
    tpu.vector_store %arg9[%c0_48, %c0_49, %c0_50, %c0_51], %87 {strides = array<i32>} : memref<1x1x1x128xf32, #tpu.memory_space<vmem>>, vector<1x1x1x128xf32>,
    %88 = arith.mulf %84, %84 : vector<64x128xf32>
    %cst_52 = arith.constant dense<0.000000e+00> : vector<128xf32>
    %89 = vector.multi_reduction <add>, %88, %cst_52 [0] : vector<64x128xf32> to vector<128xf32>
    %90 = vector.shape_cast %89 : vector<128xf32> to vector<1x128xf32>
    %c0_53 = arith.constant 0 : index
    %c0_54 = arith.constant 0 : index
    %c0_55 = arith.constant 0 : index
    %c0_56 = arith.constant 0 : index
    %91 = vector.load %arg10[%c0_53, %c0_54, %c0_55, %c0_56] : memref<1x1x1x128xf32, #tpu.memory_space<vmem>>, vector<1x1x1x128xf32>
    %92 = vector.shape_cast %91 : vector<1x1x1x128xf32> to vector<1x128xf32>
    %93 = vector.shape_cast %90 : vector<1x128xf32> to vector<1x1x1x128xf32>
    tpu.vector_store %arg10[%c0_53, %c0_54, %c0_55, %c0_56], %93 {strides = array<i32>} : memref<1x1x1x128xf32, #tpu.memory_space<vmem>>, vector<1x1x1x128xf32>,
    return
  }
  func.func @transform_0(%arg0: i32, %arg1: i32) -> (i32, i32, i32, i32) {
    %c0_i32 = arith.constant 0 : i32
    %c0_i32_0 = arith.constant 0 : i32
    %c0_i32_1 = arith.constant 0 : i32
    return %arg0, %arg1, %c0_i32, %c0_i32_0 : i32, i32, i32, i32
  }
  func.func @transform_1(%arg0: i32, %arg1: i32) -> (i32, i32, i32, i32) {
    %c4_i32 = arith.constant 4 : i32
    %0 = arith.muli %arg1, %c4_i32 : i32
    %c1_i32 = arith.constant 1 : i32
    %1 = arith.subi %0, %c1_i32 : i32
    %c0_i32 = arith.constant 0 : i32
    %2 = arith.maxsi %1, %c0_i32 : i32
    %c0_i32_0 = arith.constant 0 : i32
    %c0_i32_1 = arith.constant 0 : i32
    %c0_i32_2 = arith.constant 0 : i32
    return %arg0, %2, %c0_i32_0, %c0_i32_1 : i32, i32, i32, i32
  }
  func.func @transform_2(%arg0: i32, %arg1: i32) -> (i32, i32, i32, i32) {
    %c4_i32 = arith.constant 4 : i32
    %0 = arith.muli %arg1, %c4_i32 : i32
    %c4_i32_0 = arith.constant 4 : i32
    %1 = arith.addi %0, %c4_i32_0 : i32
    %c15_i32 = arith.constant 15 : i32
    %2 = arith.minsi %1, %c15_i32 : i32
    %c0_i32 = arith.constant 0 : i32
    %c0_i32_1 = arith.constant 0 : i32
    %c0_i32_2 = arith.constant 0 : i32
    return %arg0, %2, %c0_i32, %c0_i32_1 : i32, i32, i32, i32
  }
  func.func @transform_3(%arg0: i32, %arg1: i32) -> (i32, i32, i32) {
    %c0_i32 = arith.constant 0 : i32
    %c0_i32_0 = arith.constant 0 : i32
    %c0_i32_1 = arith.constant 0 : i32
    %c0_i32_2 = arith.constant 0 : i32
    return %c0_i32, %c0_i32_0, %c0_i32_1 : i32, i32, i32
  }
  func.func @transform_4(%arg0: i32, %arg1: i32) -> (i32, i32) {
    %c0_i32 = arith.constant 0 : i32
    %c0_i32_0 = arith.constant 0 : i32
    %c0_i32_1 = arith.constant 0 : i32
    return %c0_i32, %c0_i32_0 : i32, i32
  }
  func.func @transform_5(%arg0: i32, %arg1: i32) -> (i32, i32) {
    %c0_i32 = arith.constant 0 : i32
    %c0_i32_0 = arith.constant 0 : i32
    %c0_i32_1 = arith.constant 0 : i32
    return %c0_i32, %c0_i32_0 : i32, i32
  }
  func.func @transform_6(%arg0: i32, %arg1: i32) -> (i32, i32, i32, i32) {
    %c0_i32 = arith.constant 0 : i32
    %c0_i32_0 = arith.constant 0 : i32
    %c0_i32_1 = arith.constant 0 : i32
    return %arg0, %arg1, %c0_i32, %c0_i32_0 : i32, i32, i32, i32
  }
  func.func @transform_7(%arg0: i32, %arg1: i32) -> (i32, i32, i32, i32) {
    %c0_i32 = arith.constant 0 : i32
    %c0_i32_0 = arith.constant 0 : i32
    %c0_i32_1 = arith.constant 0 : i32
    return %arg0, %arg1, %c0_i32, %c0_i32_0 : i32, i32, i32, i32
  }
  func.func @transform_8(%arg0: i32, %arg1: i32) -> (i32, i32, i32, i32) {
    %c0_i32 = arith.constant 0 : i32
    %c0_i32_0 = arith.constant 0 : i32
    %c0_i32_1 = arith.constant 0 : i32
    return %arg0, %arg1, %c0_i32, %c0_i32_0 : i32, i32, i32, i32
  }
}

</mosaic_0001>

<bundles_post_ra>
// kernel: unet_conv2_forward.5
= control target key start
LH: loop header
LB: loop body
LE: loop exit
PB: predicated region body
PF: predicated region fallthrough
CT: control target
= control target key end

     0   :  { %s583_s12 = smov 0   ;;  %s585_s13 = smov 0   ;;  %s647_s0 = inlined_call_operand.vmem [shape: bf16[2,16,16,128], index: 0, kind: input, shape index: {}]   ;;  %s648_s1 = inlined_call_operand.vmem [shape: f32[1,128], index: 1, kind: input, shape index: {}]   ;;  %s649_s2 = inlined_call_operand.vmem [shape: f32[1,128], index: 2, kind: input, shape index: {}]   ;;  %s650_s3 = inlined_call_operand.vmem [shape: bf16[2,16,16,128], index: 3, kind: output, shape index: {}]  }
   0x1   :  { %s587_s14 = smov 0   ;;  %s589_s15 = smov 0  }
   0x2   :  { %s591_s16 = smov 0  }
   0x3 LB: > { %s22_s17 = sadd.s32 1, %s553_s14  ;;  %s25_s18 = sadd.s32 1, %s557_s15  ;;  %s561_s16 = sphi %s591_s16, %s13_s16   ;;  %s557_s15 = sphi %s589_s15, %s654_s15   ;;  %s553_s14 = sphi %s587_s14, %s653_s14   ;;  %s549_s13 = sphi %s585_s13, %s652_s13   ;;  %s545_s12 = sphi %s583_s12, %s651_s12  }
   0x4   : > { %p23_p0 = scmp.ge.s32.totalorder %s22_s17, 4  ;;  %p412_p1 = scmp.ge.s32.totalorder %s561_s16, 1 }
   0x5   : > { %p159_p2 = scmp.lt.s32.totalorder %s561_s16, 9 }
   0x6   : > { %s656_s17 = smov (%p23_p0, %s22_s17), 0  ;;  %s658_s18 = smov (!%p23_p0, %s25_s18), %s557_s15 }
   0x7   : > { %p160_p3 = pnand %p412_p1, %p159_p2  ;;  %p27_p4 = scmp.ge.s32.totalorder %s658_s18, 2 }
   0x8   : > { %s413_s19 = sshll.u32 (!%p160_p3), %s545_s12, 2  ;;  %p194_p5 = scmp.lt.s32.totalorder (!%p160_p3), %s549_s13, 1  ;;  %v421_v0 = vld [vmem:[%s648_s1] ss:$0 sm:$0xff] (!%p160_p3) }
   0x9   : > { %s660_s18 = smov (%p27_p4, %s658_s18), 0  ;;  %163 = sbr.rel (%p160_p3) target bundleno = 34 (0x22), region = 32 }
   0xa   : > { %p196_p6 = scmp.lt.s32.totalorder (!%p160_p3), %s413_s19, 15  ;;  %v422_v9 = vld [vmem:[%s649_s2] ss:$0 sm:$0xff] (!%p160_p3) }
  0x10   : > { %s662_s13 = smov (!%p194_p5, %s549_s13), 1  ;;  %s664_s19 = smov (!%p196_p6, %s413_s19), 15 }
  0x11   : > { %s415_s20 = sshll.u32 %s662_s13, 5  ;;  %s414_s21 = sshll.u32 %s664_s19, 1 }
  0x12   : > { %s613_s22 = sadd.s32 %s415_s20, %s414_s21 }
  0x13   : > { %s416_s23 = sshll.u32 %s613_s22, 2 }
  0x14   : > { %s202_s26 = scalar_lea.vmem %s647_s0, %s416_s23  ;;  %s213_s6 = scalar_lea.vmem %s650_s3, %s416_s23 }
  0x15   : > { %v442_v1 = vld [vmem:[%s202_s26] sm:$0xff]   ;;  %v477_v2 = vld [vmem:[%s202_s26 + $0x8] sm:$0xff]   ;;  %v478_v3 = vld [vmem:[%s202_s26 + $0x10] sm:$0xff]  }
  0x16   : > { %v443_v4 = vunpack.c.l.bf16 %v442_v1  ;;  %v444_v5 = vunpack.c.h.bf16 %v442_v1  ;;  %v447_v6 = vunpack.c.l.bf16 %v477_v2  ;;  %v448_v7 = vunpack.c.h.bf16 %v477_v2  ;;  %v479_v8 = vld [vmem:[%s202_s26 + $0x18] sm:$0xff]  }
  0x17   : > { %v451_v10 = vunpack.c.l.bf16 %v478_v3  ;;  %v452_v11 = vunpack.c.h.bf16 %v478_v3  ;;  %v455_v12 = vunpack.c.l.bf16 %v479_v8  ;;  %v456_v13 = vunpack.c.h.bf16 %v479_v8 }
  0x18   : > { %v238_v14 = vmul.f32 %v443_v4, %v421_v0  ;;  %v239_v15 = vmul.f32 %v444_v5, %v421_v0  ;;  %v240_v16 = vmul.f32 %v447_v6, %v421_v0  ;;  %v241_v17 = vmul.f32 %v448_v7, %v421_v0 }
  0x19   : > { %v242_v18 = vmul.f32 %v451_v10, %v421_v0  ;;  %v243_v19 = vmul.f32 %v452_v11, %v421_v0  ;;  %v244_v20 = vmul.f32 %v455_v12, %v421_v0  ;;  %v245_v21 = vmul.f32 %v456_v13, %v421_v0 }
  0x1a   : > { %v253_v22 = vadd.f32 %v422_v9, %v238_v14  ;;  %v254_v23 = vadd.f32 %v422_v9, %v239_v15  ;;  %v255_v24 = vadd.f32 %v422_v9, %v240_v16  ;;  %v256_v25 = vadd.f32 %v422_v9, %v241_v17 }
  0x1b   : > { %v257_v26 = vadd.f32 %v422_v9, %v242_v18  ;;  %v258_v27 = vadd.f32 %v422_v9, %v243_v19  ;;  %v259_v28 = vadd.f32 %v422_v9, %v244_v20  ;;  %v260_v29 = vadd.f32 %v422_v9, %v245_v21 }
  0x1c   : > { %v261_v30 = vmax.f32 %v253_v22, 0.0  ;;  %v262_v31 = vmax.f32 %v254_v23, 0.0  ;;  %v263_v32 = vmax.f32 %v255_v24, 0.0  ;;  %v264_v33 = vmax.f32 %v256_v25, 0.0 }
  0x1d   : > { %v265_v34 = vmax.f32 %v257_v26, 0.0  ;;  %v266_v35 = vmax.f32 %v258_v27, 0.0  ;;  %v267_v36 = vmax.f32 %v259_v28, 0.0  ;;  %v268_v37 = vmax.f32 %v260_v29, 0.0 }
  0x1e   : > { %v460_v38 = vpack.c.bf16 %v262_v31, %v261_v30  ;;  %v465_v39 = vpack.c.bf16 %v264_v33, %v263_v32 }
  0x1f   : > { %v470_v40 = vpack.c.bf16 %v266_v35, %v265_v34  ;;  %v475_v41 = vpack.c.bf16 %v268_v37, %v267_v36 }
  0x20   : > { %461 = vst [vmem:[%s213_s6] sm:$0xff] %v460_v38   ;;  %480 = vst [vmem:[%s213_s6 + $0x8] sm:$0xff] %v465_v39  }
  0x21   : > { %481 = vst [vmem:[%s213_s6 + $0x10] sm:$0xff] %v470_v40   ;;  %482 = vst [vmem:[%s213_s6 + $0x18] sm:$0xff] %v475_v41  }
  0x22 PF: > { %s13_s16 = sadd.s32 1, %s561_s16   ;;  %s651_s12 = smov %s553_s14 }
  0x23   : > { %p10_p7 = scmp.ge.s32.totalorder %s13_s16, 10   ;;  %s652_s13 = smov %s557_s15 }
  0x24   : > { %s653_s14 = smov %s656_s17  ;;  %s654_s15 = smov %s660_s18 }
  0x25   :  { %12 = sbr.rel (!%p10_p7) target bundleno = 3 (0x3), region = 62 }

// kernel: unet_conv2_forward.3
= control target key start
LH: loop header
LB: loop body
LE: loop exit
PB: predicated region body
PF: predicated region fallthrough
CT: control target
= control target key end

     0   :  { %s2720_s27 = smov 0   ;;  %s2722_s28 = smov 0   ;;  %s3167_s0 = inlined_call_operand.vmem [shape: bf16[2,16,16,128], index: 0, kind: input, shape index: {}, may-alias: {0,1,2}]   ;;  %s3168_s1 = inlined_call_operand.vmem [shape: bf16[2,16,16,128], index: 1, kind: input, shape index: {}, may-alias: {0,1,2}]   ;;  %s3169_s2 = inlined_call_operand.vmem [shape: bf16[2,16,16,128], index: 2, kind: input, shape index: {}, may-alias: {0,1,2}]   ;;  %s3170_s3 = inlined_call_operand.vmem [shape: bf16[3,384,128], index: 3, kind: input, shape index: {}]   ;;  %s3171_s4 = inlined_call_operand.vmem [shape: f32[1,128], index: 4, kind: input, shape index: {}]   ;;  %s3172_s5 = inlined_call_operand.vmem [shape: f32[1,128], index: 5, kind: input, shape index: {}]   ;;  %s3173_s6 = inlined_call_operand.vmem [shape: bf16[2,16,16,128], index: 6, kind: output, shape index: {0}]   ;;  %s3174_s7 = inlined_call_operand.vmem [shape: f32[2,4,1,128], index: 7, kind: output, shape index: {1}]   ;;  %s3175_s8 = inlined_call_operand.vmem [shape: f32[2,4,1,128], index: 8, kind: output, shape index: {2}]  }
   0x1   :  { %s2724_s29 = smov 0   ;;  %s2726_s30 = smov 0  }
   0x2   :  { %s2728_s4 = smov 0  }
   0x3 LB: > { %s28_s5 = sadd.s32 1, %s2665_s29  ;;  %s31_s9 = sadd.s32 1, %s2669_s30  ;;  %s2673_s4 = sphi %s2728_s4, %s19_s4   ;;  %s2669_s30 = sphi %s2726_s30, %s3184_s30   ;;  %s2665_s29 = sphi %s2724_s29, %s3183_s29   ;;  %s2661_s28 = sphi %s2722_s28, %s3182_s28   ;;  %s2657_s27 = sphi %s2720_s27, %s3181_s27  }
   0x4   : > { %p29_p0 = scmp.ge.s32.totalorder %s28_s5, 4  ;;  %p2006_p1 = scmp.ge.s32.totalorder %s2673_s4, 1 }
   0x5   : > { %p357_p2 = scmp.lt.s32.totalorder %s2673_s4, 9 }
   0x6   : > { %s3186_s5 = smov (%p29_p0, %s28_s5), 0  ;;  %s3188_s9 = smov (!%p29_p0, %s31_s9), %s2669_s30 }
   0x7   : > { %p358_p3 = pnand %p2006_p1, %p357_p2  ;;  %p33_p4 = scmp.ge.s32.totalorder %s3188_s9, 2 }
   0x8   : > { %v2559_v0 = vld [vmem:[%s3170_s3 + $0x40] sm:$0xff] (!%p358_p3)   ;;  %s2756_s12 = sshll.u32 (!%p358_p3), %s2657_s27, 2  ;;  %p442_p5 = scmp.lt.s32.totalorder (!%p358_p3), %s2661_s28, 1  ;;  %v2562_v3 = vld [vmem:[%s3170_s3 + $0x48] sm:$0xff] (!%p358_p3)   ;;  %v2565_v6 = vld [vmem:[%s3170_s3 + $0x50] sm:$0xff] (!%p358_p3)   ;;  %vm614_vm2 = vcmask (!%p358_p3), 1040384  }
   0x9   : > { %s3190_s9 = smov (%p33_p4, %s3188_s9), 0  ;;  %361 = sbr.rel (%p358_p3) target bundleno = 399 (0x18f), region = 44 }
   0xa   : > { %v2560_v1 = vld [vmem:[%s3170_s3 + $0x80] sm:$0xff] (!%p358_p3)   ;;  %2251 = vmatprep.subr.bf16.mxu0 (!%p358_p3), %v2559_v0  ;;  %p444_p6 = scmp.lt.s32.totalorder (!%p358_p3), %s2756_s12, 15  ;;  %v2563_v4 = vld [vmem:[%s3170_s3 + $0x88] sm:$0xff] (!%p358_p3)   ;;  %v2566_v7 = vld [vmem:[%s3170_s3 + $0x90] sm:$0xff] (!%p358_p3)   ;;  %s2012_s11 = sadd.s32 (!%p358_p3), 4294967295, %s2756_s12  ;;  %vm641_vm3 = vcmask (!%p358_p3), 1047552  }
   0xb   : > { %v2561_v2 = vld [vmem:[%s3170_s3] sm:$0xff] (!%p358_p3)   ;;  %2407 = vmatprep.subr.bf16.mxu1 (!%p358_p3), %v2560_v1  ;;  %v2564_v5 = vld [vmem:[%s3170_s3 + $0x8] sm:$0xff] (!%p358_p3)   ;;  %v2567_v8 = vld [vmem:[%s3170_s3 + $0x10] sm:$0xff] (!%p358_p3)   ;;  %p454_p7 = scmp.gt.s32.totalorder (!%p358_p3), %s2012_s11, 0  ;;  %p2013_p8 = scmp.lt.s32.totalorder (!%p358_p3), %s2012_s11, 15 }
   0xc   : > { %2252 = vmatpush3.bf16.msra.mxu0 (!%p358_p3), %v2561_v2  ;;  %2408 = vmatpush3.bf16.msra.mxu1 (!%p358_p3), %v2560_v1  ;;  %v2568_v9 = vld [vmem:[%s3170_s3 + $0x58] sm:$0xff] (!%p358_p3)   ;;  %v2571_v12 = vld [vmem:[%s3170_s3 + $0x60] sm:$0xff] (!%p358_p3)   ;;  %s470_s24 = sadd.s32 (!%p358_p3), 4, %s2756_s12  ;;  %v2574_v15 = vld [vmem:[%s3170_s3 + $0x68] sm:$0xff] (!%p358_p3)   ;;  %p524_p10 = scmp.eq.s32.totalorder (!%p358_p3), %s2657_s27, 0 }
   0xd   : > { %2253 = vmatprep.subr.bf16.mxu0 (!%p358_p3), %v2562_v3  ;;  %2409 = vmatprep.subr.bf16.mxu1 (!%p358_p3), %v2563_v4  ;;  %v2569_v10 = vld [vmem:[%s3170_s3 + $0x98] sm:$0xff] (!%p358_p3)   ;;  %v2572_v13 = vld [vmem:[%s3170_s3 + $0xa0] sm:$0xff] (!%p358_p3)   ;;  %p2812_p9 = scmp.lt.s32.totalorder (!%p358_p3), %s470_s24, 15  ;;  %v2575_v16 = vld [vmem:[%s3170_s3 + $0xa8] sm:$0xff] (!%p358_p3)   ;;  %vm615_vm0 = vsmask.f32 (!%p358_p3), 256 }
   0xe   : > { %v2570_v11 = vld [vmem:[%s3170_s3 + $0x18] sm:$0xff] (!%p358_p3)   ;;  %v2573_v14 = vld [vmem:[%s3170_s3 + $0x20] sm:$0xff] (!%p358_p3)   ;;  %v2576_v17 = vld [vmem:[%s3170_s3 + $0x28] sm:$0xff] (!%p358_p3)   ;;  %vm642_vm4 = vsmask.f32 (!%p358_p3), 7424  ;;  %p530_p11 = scmp.eq.s32.totalorder (!%p358_p3), %s2657_s27, 3 }
   0xf   : > { %v2577_v18 = vld [vmem:[%s3170_s3 + $0x70] sm:$0xff] (!%p358_p3)   ;;  %v2580_v21 = vld [vmem:[%s3170_s3 + $0x78] sm:$0xff] (!%p358_p3)   ;;  %v2583_v26 = vld [vmem:[%s3170_s3 + $0x100] sm:$0xff] (!%p358_p3)   ;;  %p499_p12 = scmp.lt.s32.totalorder (!%p358_p3), %s2657_s27, 3 }
  0x10   : > { %s3192_s28 = smov (!%p442_p5, %s2661_s28), 1  ;;  %2254 = vmatpush3.bf16.msra.mxu0 %v2564_v5  ;;  %2410 = vmatpush3.bf16.msra.mxu1 %v2563_v4  ;;  %s3194_s11 = smov (!%p454_p7, %s2012_s11), 0  ;;  %v2578_v19 = vld [vmem:[%s3170_s3 + $0xb0] sm:$0xff]   ;;  %v2581_v22 = vld [vmem:[%s3170_s3 + $0xb8] sm:$0xff]   ;;  %v2584_v27 = vld [vmem:[%s3170_s3 + $0x140] sm:$0xff]  }
  0x11   : > { %s2780_s25 = scalar_select %p444_p6, %s2756_s12, 15  ;;  %2255 = vmatprep.subr.bf16.mxu0 %v2565_v6  ;;  %2411 = vmatprep.subr.bf16.mxu1 %v2566_v7  ;;  %v2579_v20 = vld [vmem:[%s3170_s3 + $0x30] sm:$0xff]   ;;  %v2582_v23 = vld [vmem:[%s3170_s3 + $0x38] sm:$0xff]   ;;  %vm2880_vm5 = vmand %vm641_vm3, %vm642_vm4 }
  0x12   : > { %s2790_s15 = sshll.u32 %s3192_s28, 5  ;;  %s3196_s11 = smov (!%p2013_p8, %s3194_s11), 15  ;;  %vm2886_vm6 = vmand %vm614_vm2, %vm615_vm0  ;;  %v2586_v44 = vld [vmem:[%s3170_s3 + $0xc0] sm:$0xff]   ;;  %v2587_v48 = vld [vmem:[%s3170_s3 + $0x108] sm:$0xff]  }
  0x13   : > { %s2008_s16 = sshll.u32 %s2780_s25, 1  ;;  %s2018_s17 = sshll.u32 %s3196_s11, 1  ;;  %v2588_v51 = vld [vmem:[%s3170_s3 + $0x148] sm:$0xff]   ;;  %v2590_v55 = vld [vmem:[%s3170_s3 + $0x110] sm:$0xff]   ;;  %v2593_v62 = vld [vmem:[%s3170_s3 + $0x118] sm:$0xff]  }
  0x14   : > { %2256 = vmatpush3.bf16.msra.mxu0 %v2567_v8  ;;  %2412 = vmatpush3.bf16.msra.mxu1 %v2566_v7  ;;  %s462_s20 = sadd.s32 %s2018_s17, %s2790_s15  ;;  %s2824_s25 = sadd.s32 %s2790_s15, %s2008_s16  ;;  %v2589_v54 = vld [vmem:[%s3170_s3 + $0xc8] sm:$0xff]   ;;  %v2591_v59 = vld [vmem:[%s3170_s3 + $0x150] sm:$0xff]   ;;  %v2594_v0 = vld [vmem:[%s3170_s3 + $0x158] sm:$0xff]  }
  0x15   : > { %2257 = vmatprep.subr.bf16.mxu0 %v2568_v9  ;;  %2413 = vmatprep.subr.bf16.mxu1 %v2569_v10  ;;  %s2020_s11 = sshll.u32 %s462_s20, 2  ;;  %s3198_s24 = smov (!%p2812_p9, %s470_s24), 15  ;;  %v2592_v60 = vld [vmem:[%s3170_s3 + $0xd0] sm:$0xff]   ;;  %v2595_v4 = vld [vmem:[%s3170_s3 + $0xd8] sm:$0xff]   ;;  %v2597_v6 = vld [vmem:[%s3170_s3 + $0x120] sm:$0xff]  }
  0x16   : > { %s3200_s24 = smov (!%p2812_p9, %s3198_s24), 15  ;;  %s2010_s17 = sshll.u32 %s2824_s25, 2  ;;  %v2598_v9 = vld [vmem:[%s3170_s3 + $0x160] sm:$0xff]   ;;  %v2633_v42 = vld [vmem:[%s3170_s3 + $0x238] sm:$0xff]  }
  0x17   : > { %s464_s20 = scalar_lea.vmem %s3168_s1, %s2020_s11  ;;  %s2843_s21 = sshll.u32 %s3200_s24, 1  ;;  %v2634_v43 = vld [vmem:[%s3170_s3 + $0x1b8] sm:$0xff]  }
  0x18   : > { %2258 = vmatpush3.bf16.msra.mxu0 %v2570_v11  ;;  %2414 = vmatpush3.bf16.msra.mxu1 %v2569_v10  ;;  %s479_s26 = sadd.s32 %s2843_s21, %s2790_s15  ;;  %s2865_s19 = scalar_lea.vmem %s3167_s0, %s2010_s17  ;;  %v512_v24 = vld [vmem:[%s464_s20] sm:$0xf]  ;;  %v513_v25 = vld [vmem:[%s464_s20 + $0x4] sm:$0xf] }
  0x19   : > { %2259 = vmatprep.subr.bf16.mxu0 %v2571_v12  ;;  %2415 = vmatprep.subr.bf16.mxu1 %v2572_v13  ;;  %s525_s22 = scalar_select %p524_p10, 1, 0  ;;  %v2876_v29 = vld [vmem:[%s2865_s19] sm:$0xff]   ;;  %v2908_v53 = vld [vmem:[%s2865_s19 + $0x8] sm:$0xff]   ;;  %v2937_v2 = vld [vmem:[%s2865_s19 + $0x10] sm:$0xff]  }
  0x1a   : > { %v574_v32 = vshrl.u32 %v2876_v29, 16  ;;  %v577_v33 = vshll.u32 %v2876_v29, 16  ;;  %v581_v56 = vshrl.u32 %v2908_v53, 16  ;;  %v584_v57 = vshll.u32 %v2908_v53, 16  ;;  %v2599_v10 = vld [vmem:[%s3170_s3 + $0xe0] sm:$0xff]   ;;  %s2027_s13 = sshll.u32 %s479_s26, 2  ;;  %s3127_s20 = scalar_lea.vmem %s3173_s6, %s2010_s17 }
  0x1b   : > { %v526_v28 = vstv %s525_s22  ;;  %v588_v7 = vshrl.u32 %v2937_v2, 16  ;;  %v591_v8 = vshll.u32 %v2937_v2, 16  ;;  %s481_s22 = scalar_lea.vmem %s3169_s2, %s2027_s13  ;;  %s3202_s27 = smov (!%p499_p12, %s2657_s27), 3 }
  0x1c   : > { %2260 = vmatpush3.bf16.msra.mxu0 %v2573_v14  ;;  %2416 = vmatpush3.bf16.msra.mxu1 %v2572_v13  ;;  %vm527_vm1 = vcmp.eq.s32.totalorder %v526_v28, 1  ;;  %v625_v35 = vrot.slane %v577_v33, 1  ;;  %v576_v39 = vrot.slane %v574_v32, 7  ;;  %v627_v61 = vrot.slane %v584_v57, 1  ;;  %v2611_v28 = vld [vmem:[%s3170_s3 + $0x200] sm:$0xff]   ;;  %s2032_s25 = sshll.u32 %s3192_s28, 2 }
  0x1d   : > { %2261 = vmatprep.subr.bf16.mxu0 %v2574_v15  ;;  %2417 = vmatprep.subr.bf16.mxu1 %v2575_v16  ;;  %v528_v30 = vsel %vm527_vm1, 0, %v512_v24  ;;  %v529_v31 = vsel %vm527_vm1, 0, %v513_v25  ;;  %v583_v63 = vrot.slane %v581_v56, 7  ;;  %v629_v11 = vrot.slane %v591_v8, 1  ;;  %v2600_v15 = vld [vmem:[%s3170_s3 + $0x128] sm:$0xff]   ;;  %v2607_v24 = vld [vmem:[%s3170_s3 + $0x138] sm:$0xff]   ;;  %s3140_s17 = sadd.s32 %s2032_s25, %s3202_s27 }
  0x1e   : > { %v2034_v34 = vcombine.low %v528_v30, %v529_v31  ;;  %v626_v38 = vor.u32 %v625_v35, %v574_v32  ;;  %v579_v52 = vor.u32 %v577_v33, %v576_v39  ;;  %v628_v1 = vor.u32 %v627_v61, %v581_v56  ;;  %v2608_v25 = vld [vmem:[%s3170_s3 + $0x178] sm:$0xff]   ;;  %v2612_v30 = vld [vmem:[%s3170_s3 + $0x180] sm:$0xff]   ;;  %v2614_v31 = vld [vmem:[%s3170_s3 + $0x208] sm:$0xff]   ;;  %s531_s11 = scalar_select %p530_p11, 1, 0 }
  0x1f   : > { %v586_v5 = vor.u32 %v584_v57, %v583_v63  ;;  %v590_v13 = vrot.slane %v588_v7, 7  ;;  %v630_v14 = vor.u32 %v629_v11, %v588_v7  ;;  %v3022_v32 = vld [vmem:[%s2865_s19 + $0x18] sm:$0xff]   ;;  %v2615_v33 = vld [vmem:[%s3170_s3 + $0x188] sm:$0xff]   ;;  %v2617_v35 = vld [vmem:[%s3170_s3 + $0x210] sm:$0xff]   ;;  %s503_s24 = scalar_lea.vmem %s3174_s7, %s3140_s17  ;;  %s510_s14 = scalar_lea.vmem %s3175_s8, %s3140_s17 }
  0x20   : > { %2262 = vmatpush3.bf16.msra.mxu0 %v2576_v17  ;;  %2418 = vmatpush3.bf16.msra.mxu1 %v2575_v16  ;;  %v567_v36 = vshrl.u32 %v2034_v34, 16  ;;  %v570_v37 = vshll.u32 %v2034_v34, 16  ;;  %v2895_v47 = vsel %vm2880_vm5, %v626_v38, 0  ;;  %v2922_v58 = vsel %vm2886_vm6, 0, %v579_v52  ;;  %v2601_v16 = vld [vmem:[%s3170_s3 + $0x168] sm:$0xff]   ;;  %v2624_v56 = vld [vmem:[%s3170_s3 + $0x1a0] sm:$0xff]  }
  0x21   : > { %2263 = vmatprep.subr.bf16.mxu0 %v2577_v18  ;;  %2419 = vmatprep.subr.bf16.mxu1 %v2578_v19  ;;  %v2942_v3 = vsel %vm2880_vm5, %v628_v1, 0  ;;  %v2962_v12 = vsel %vm2886_vm6, 0, %v586_v5  ;;  %v2972_v17 = vsel %vm2880_vm5, %v630_v14, 0  ;;  %v2602_v18 = vld [vmem:[%s3170_s3 + $0xe8] sm:$0xff]   ;;  %v595_v38 = vshrl.u32 %v3022_v32, 16  ;;  %v2632_v11 = vld [vmem:[%s3170_s3 + $0x1f8] sm:$0xff]  }
  0x22   : > { %880 = vmatprep.mubr.bf16.mxu0 %v2034_v34  ;;  %v569_v40 = vrot.slane %v567_v36, 7  ;;  %v623_v41 = vrot.slane %v570_v37, 1  ;;  %v2616_v34 = vld [vmem:[%s3170_s3 + $0x1d0] sm:$0xff]   ;;  %v2626_v61 = vld [vmem:[%s3170_s3 + $0x228] sm:$0xff]  }
  0x23   : > { %v597_v57 = vrot.slane %v595_v38, 7 }
  0x24   : > { %2264 = vmatpush3.bf16.msra.mxu0 %v2579_v20  ;;  %2420 = vmatpush3.bf16.msra.mxu1 %v2578_v19  ;;  %v572_v45 = vor.u32 %v570_v37, %v569_v40  ;;  %v624_v46 = vor.u32 %v623_v41, %v567_v36  ;;  %v593_v19 = vor.u32 %v591_v8, %v590_v13  ;;  %v2604_v20 = vld [vmem:[%s3170_s3 + $0x130] sm:$0xff]   ;;  %v598_v36 = vshll.u32 %v3022_v32, 16  ;;  %v2619_v40 = vld [vmem:[%s3170_s3 + $0x1d8] sm:$0xff]  }
  0x25   : > { %2265 = vmatprep.subr.bf16.mxu0 %v2580_v21  ;;  %2421 = vmatprep.subr.bf16.mxu1 %v2581_v22  ;;  %v2605_v21 = vld [vmem:[%s3170_s3 + $0x170] sm:$0xff]  }
  0x26   : > { %v617_v49 = vsel %vm2886_vm6, 0, %v572_v45  ;;  %v644_v50 = vsel %vm2880_vm5, %v624_v46, 0  ;;  %v2618_v37 = vld [vmem:[%s3170_s3 + $0x190] sm:$0xff]   ;;  %v631_v39 = vrot.slane %v598_v36, 1  ;;  %v522_v46 = vld [vmem:[%s481_s22] sm:$0xf]  ;;  %v600_v1 = vor.u32 %v598_v36, %v597_v57 }
  0x27   : > { %2423 = vmatprep.mubr.bf16.mxu1 %v644_v50  ;;  %v2622_v50 = vld [vmem:[%s3170_s3 + $0x1e0] sm:$0xff]  }
  0x28   : > { %2266 = vmatpush3.bf16.msra.mxu0 %v2582_v23  ;;  %2422 = vmatpush3.bf16.msra.mxu1 %v2581_v22  ;;  %v2989_v22 = vsel %vm2886_vm6, 0, %v593_v19  ;;  %v2606_v23 = vld [vmem:[%s3170_s3 + $0xf0] sm:$0xff]   ;;  %v632_v41 = vor.u32 %v631_v39, %v595_v38 }
  0x29   : > { %2303 = vmatprep.subr.bf16.mxu0 %v2583_v26  ;;  %2431 = vmatprep.subr.bf16.mxu1 %v2584_v27  ;;  %v2609_v26 = vld [vmem:[%s3170_s3 + $0xf8] sm:$0xff]  }
  0x2a   : > { %v3059_v45 = vsel %vm2880_vm5, %v632_v41, 0 }
  0x2b   : > { %881 = vmatmul.mubr.bf16.vlgmr.msra.gmra.mrb[0].mxu0 %v617_v49  ;;  %2424 = vmatmul.mubr.bf16.vlgmr.msra.gmra.mrb[0].mxu1 %v2895_v47  ;;  %v532_v49 = vstv %s531_s11 }
  0x2c   : > { %2304 = vmatpush3.bf16.msra.mxu0 %v2586_v44  ;;  %2432 = vmatpush3.bf16.msra.mxu1 %v2584_v27  ;;  %v2610_v27 = vld [vmem:[%s3170_s3 + $0x1c0] sm:$0xff]   ;;  %v2620_v44 = vld [vmem:[%s3170_s3 + $0x218] sm:$0xff]   ;;  %vm533_vm7 = vcmp.eq.s32.totalorder %v532_v49, 1 }
  0x2d   : > { %2305 = vmatprep.subr.bf16.mxu0 %v2587_v48  ;;  %2433 = vmatprep.subr.bf16.mxu1 %v2588_v51  ;;  %v2621_v48 = vld [vmem:[%s3170_s3 + $0x198] sm:$0xff]   ;;  %v534_v52 = vsel %vm533_vm7, 0, %v522_v46 }
  0x2e   : > { %888 = vmatprep.mubr.bf16.mxu0 %v2876_v29  ;;  %2427 = vmatprep.mubr.bf16.mxu1 %v2942_v3 }
  0x30   : > { %2306 = vmatpush3.bf16.msra.mxu0 %v2589_v54  ;;  %2434 = vmatpush3.bf16.msra.mxu1 %v2588_v51  ;;  %v2623_v51 = vld [vmem:[%s3170_s3 + $0x220] sm:$0xff]  }
  0x31   : > { %2307 = vmatprep.subr.bf16.mxu0 %v2590_v55  ;;  %2435 = vmatprep.subr.bf16.mxu1 %v2591_v59 }
  0x33   : > { %889 = vmatmul.mubr.bf16.gmra.mrb[4].mxu0 %v2922_v58  ;;  %2428 = vmatmul.mubr.bf16.gmra.mrb[4].mxu1 %v2972_v17 }
  0x34   : > { %2308 = vmatpush3.bf16.msra.mxu0 %v2592_v60  ;;  %896 = vmatprep.mubr.bf16.mxu0 %v2908_v53 }
  0x35   : > { %2436 = vmatpush3.bf16.msra.mxu1 %v2591_v59  ;;  %2309 = vmatprep.subr.bf16.mxu0 %v2593_v62 }
  0x36   : > { %2437 = vmatprep.subr.bf16.mxu1 %v2594_v0  ;;  %2447 = vmatprep.mubr.bf16.mxu1 %v2895_v47  ;;  %v523_v47 = vld [vmem:[%s481_s22 + $0x4] sm:$0xf] }
  0x37   : > { %v535_v54 = vsel %vm533_vm7, 0, %v523_v47 }
  0x38   : > { %2310 = vmatpush3.bf16.msra.mxu0 %v2595_v4  ;;  %v2039_v55 = vcombine.low %v534_v52, %v535_v54 }
  0x39   : > { %2438 = vmatpush3.bf16.msra.mxu1 %v2594_v0  ;;  %2311 = vmatprep.subr.bf16.mxu0 %v2597_v6  ;;  %v2627_v0 = vld [vmem:[%s3170_s3 + $0x1a8] sm:$0xff]   ;;  %v2630_v6 = vld [vmem:[%s3170_s3 + $0x230] sm:$0xff]  }
  0x3a   : > { %2439 = vmatprep.subr.bf16.mxu1 %v2598_v9  ;;  %v602_v59 = vshrl.u32 %v2039_v55, 16  ;;  %v605_v60 = vshll.u32 %v2039_v55, 16 }
  0x3b   : > { %897 = vmatmul.mubr.bf16.gmra.mrb[8].mxu0 %v2962_v12 }
  0x3c   : > { %2312 = vmatpush3.bf16.msra.mxu0 %v2599_v10  ;;  %904 = vmatprep.mubr.bf16.mxu0 %v2937_v2  ;;  %v633_v62 = vrot.slane %v605_v60, 1  ;;  %v604_v63 = vrot.slane %v602_v59, 7  ;;  %v2631_v10 = vld [vmem:[%s3170_s3 + $0x1b0] sm:$0xff]  }
  0x3d   : > { %2440 = vmatpush3.bf16.msra.mxu1 %v2598_v9  ;;  %2313 = vmatprep.subr.bf16.mxu0 %v2600_v15  ;;  %v621_v9 = vsel %vm2886_vm6, 0, %v600_v1 }
  0x3e   : > { %2441 = vmatprep.subr.bf16.mxu1 %v2601_v16  ;;  %v634_v4 = vor.u32 %v633_v62, %v602_v59  ;;  %v607_v5 = vor.u32 %v605_v60, %v604_v63 }
  0x40   : > { %2314 = vmatpush3.bf16.msra.mxu0 %v2602_v18  ;;  %v649_v7 = vsel %vm2880_vm5, %v634_v4, 0  ;;  %v622_v8 = vsel %vm2886_vm6, 0, %v607_v5 }
  0x41   : > { %2442 = vmatpush3.bf16.msra.mxu1 %v2601_v16  ;;  %2315 = vmatprep.subr.bf16.mxu0 %v2604_v20 }
  0x42   : > { %2443 = vmatprep.subr.bf16.mxu1 %v2605_v21 }
  0x43   : > { %905 = vmatmul.mubr.bf16.gmra.mrb[12].mxu0 %v2989_v22 }
  0x44   : > { %2316 = vmatpush3.bf16.msra.mxu0 %v2606_v23  ;;  %1219 = vmatprep.mubr.bf16.mxu0 %v2876_v29  ;;  %v2613_v29 = vld [vmem:[%s3170_s3 + $0x1c8] sm:$0xff]  }
  0x45   : > { %2444 = vmatpush3.bf16.msra.mxu1 %v2605_v21  ;;  %2317 = vmatprep.subr.bf16.mxu0 %v2607_v24 }
  0x46   : > { %2445 = vmatprep.subr.bf16.mxu1 %v2608_v25 }
  0x48   : > { %2318 = vmatpush3.bf16.msra.mxu0 %v2609_v26 }
  0x49   : > { %2446 = vmatpush3.bf16.msra.mxu1 %v2608_v25  ;;  %2355 = vmatprep.subr.bf16.mxu0 %v2610_v27 }
  0x4a   : > { %2455 = vmatprep.subr.bf16.mxu1 %v2611_v28 }
  0x4b   : > { %1220 = vmatmul.mubr.bf16.vlgmr.msra.gmra.mrb[16].mxu0 %v2922_v58  ;;  %v2625_v58 = vld [vmem:[%s3170_s3 + $0x1e8] sm:$0xff]  }
  0x4c   : > { %2448 = vmatmul.mubr.bf16.vlgmr.msra.gmra.mrb[0].mxu1 %v2942_v3  ;;  %2356 = vmatpush3.bf16.msra.mxu0 %v2612_v30 }
  0x4d   : > { %2456 = vmatpush3.bf16.msra.mxu1 %v2611_v28  ;;  %2357 = vmatprep.subr.bf16.mxu0 %v2613_v29 }
  0x4e   : > { %2457 = vmatprep.subr.bf16.mxu1 %v2614_v31  ;;  %1227 = vmatprep.mubr.bf16.mxu0 %v2908_v53 }
  0x4f   : > { %2451 = vmatprep.mubr.bf16.mxu1 %v2972_v17 }
  0x50   : > { %2358 = vmatpush3.bf16.msra.mxu0 %v2615_v33 }
  0x51   : > { %2458 = vmatpush3.bf16.msra.mxu1 %v2614_v31  ;;  %2359 = vmatprep.subr.bf16.mxu0 %v2616_v34 }
  0x52   : > { %2459 = vmatprep.subr.bf16.mxu1 %v2617_v35 }
  0x53   : > { %1228 = vmatmul.mubr.bf16.gmra.mrb[20].mxu0 %v2962_v12 }
  0x54   : > { %2360 = vmatpush3.bf16.msra.mxu0 %v2618_v37  ;;  %1235 = vmatprep.mubr.bf16.mxu0 %v2937_v2 }
  0x55   : > { %2460 = vmatpush3.bf16.msra.mxu1 %v2617_v35  ;;  %2361 = vmatprep.subr.bf16.mxu0 %v2619_v40 }
  0x56   : > { %2461 = vmatprep.subr.bf16.mxu1 %v2620_v44  ;;  %2452 = vmatmul.mubr.bf16.gmra.mrb[4].mxu1 %v3059_v45 }
  0x57   : > { %2471 = vmatprep.mubr.bf16.mxu1 %v2942_v3  ;;  %v2629_v3 = vld [vmem:[%s3170_s3 + $0x1f0] sm:$0xff]  }
  0x58   : > { %2362 = vmatpush3.bf16.msra.mxu0 %v2621_v48 }
  0x59   : > { %2462 = vmatpush3.bf16.msra.mxu1 %v2620_v44  ;;  %2363 = vmatprep.subr.bf16.mxu0 %v2622_v50 }
  0x5a   : > { %2463 = vmatprep.subr.bf16.mxu1 %v2623_v51 }
  0x5b   : > { %1236 = vmatmul.mubr.bf16.gmra.mrb[24].mxu0 %v2989_v22 }
  0x5c   : > { %2364 = vmatpush3.bf16.msra.mxu0 %v2624_v56  ;;  %1243 = vmatprep.mubr.bf16.mxu0 %v3022_v32 }
  0x5d   : > { %2464 = vmatpush3.bf16.msra.mxu1 %v2623_v51  ;;  %2365 = vmatprep.subr.bf16.mxu0 %v2625_v58 }
  0x5e   : > { %2465 = vmatprep.subr.bf16.mxu1 %v2626_v61 }
  0x60   : > { %2366 = vmatpush3.bf16.msra.mxu0 %v2627_v0 }
  0x61   : > { %2466 = vmatpush3.bf16.msra.mxu1 %v2626_v61  ;;  %2367 = vmatprep.subr.bf16.mxu0 %v2629_v3 }
  0x62   : > { %2467 = vmatprep.subr.bf16.mxu1 %v2630_v6 }
  0x63   : > { %1244 = vmatmul.mubr.bf16.gmra.mrb[28].mxu0 %v621_v9 }
  0x64   : > { %2368 = vmatpush3.bf16.msra.mxu0 %v2631_v10  ;;  %1566 = vmatprep.mubr.bf16.mxu0 %v2908_v53 }
  0x65   : > { %2468 = vmatpush3.bf16.msra.mxu1 %v2630_v6  ;;  %2369 = vmatprep.subr.bf16.mxu0 %v2632_v11 }
  0x66   : > { %2469 = vmatprep.subr.bf16.mxu1 %v2633_v42 }
  0x68   : > { %2370 = vmatpush3.bf16.msra.mxu0 %v2634_v43 }
  0x69   : > { %2470 = vmatpush3.bf16.msra.mxu1 %v2633_v42 }
  0x6b   : > { %1567 = vmatmul.mubr.bf16.vlgmr.msra.gmra.mrb[32].mxu0 %v2962_v12 }
  0x6c   : > { %2472 = vmatmul.mubr.bf16.vlgmr.msra.gmra.mrb[0].mxu1 %v2972_v17  ;;  %1574 = vmatprep.mubr.bf16.mxu0 %v2937_v2 }
  0x6d   : > { %2475 = vmatprep.mubr.bf16.mxu1 %v3059_v45 }
  0x73   : > { %1575 = vmatmul.mubr.bf16.gmra.mrb[36].mxu0 %v2989_v22 }
  0x74   : > { %2476 = vmatmul.mubr.bf16.gmra.mrb[4].mxu1 %v649_v7  ;;  %1582 = vmatprep.mubr.bf16.mxu0 %v3022_v32 }
  0x7b   : > { %1583 = vmatmul.mubr.bf16.gmra.mrb[40].mxu0 %v621_v9 }
  0x7c   : > { %1590 = vmatprep.mubr.bf16.mxu0 %v2039_v55 }
  0x83   : > { %1591 = vmatmul.mubr.bf16.gmra.mrb[44].mxu0 %v622_v8 }
  0xfe   : > { %v2267_v53 = vpop.f32.mrb[0].mxu0 }
  0xff   : > { %v2268_v13 = vpop.f32.mrb[1].mxu0 }
 0x100   : > { %v2269_v14 = vadd.f32 %v2268_v13, %v2267_v53  ;;  %v2270_v15 = vpop.f32.mrb[2].mxu0 }
 0x101   : > { %v2271_v16 = vpop.f32.mrb[3].mxu0 }
 0x102   : > { %v2272_v12 = vadd.f32 %v2271_v16, %v2270_v15 }
 0x106   : > { %v2273_v18 = vpop.f32.mrb[4].mxu0 }
 0x107   : > { %v2274_v17 = vpop.f32.mrb[5].mxu0 }
 0x108   : > { %v2275_v19 = vadd.f32 %v2274_v17, %v2273_v18  ;;  %v2276_v2 = vpop.f32.mrb[6].mxu0 }
 0x109   : > { %v2277_v20 = vpop.f32.mrb[7].mxu0 }
 0x10a   : > { %v2278_v21 = vadd.f32 %v2277_v20, %v2276_v2 }
 0x10e   : > { %v2279_v23 = vpop.f32.mrb[8].mxu0 }
 0x10f   : > { %v2280_v22 = vpop.f32.mrb[9].mxu0 }
 0x110   : > { %v2281_v24 = vadd.f32 %v2280_v22, %v2279_v23  ;;  %v2282_v25 = vpop.f32.mrb[10].mxu0 }
 0x111   : > { %v2283_v26 = vpop.f32.mrb[11].mxu0 }
 0x112   : > { %v2284_v27 = vadd.f32 %v2283_v26, %v2282_v25 }
 0x116   : > { %v2285_v28 = vpop.f32.mrb[12].mxu0 }
 0x117   : > { %v2286_v30 = vpop.f32.mrb[13].mxu0 }
 0x118   : > { %v2287_v29 = vadd.f32 %v2286_v30, %v2285_v28  ;;  %v2288_v31 = vpop.f32.mrb[14].mxu0 }
 0x119   : > { %v2289_v32 = vpop.f32.mrb[15].mxu0 }
 0x11a   : > { %v2290_v33 = vadd.f32 %v2289_v32, %v2288_v31 }
 0x11e   : > { %v2319_v34 = vpop.f32.mrb[16].mxu0 }
 0x11f   : > { %v2320_v35 = vpop.f32.mrb[17].mxu0 }
 0x120   : > { %v2321_v36 = vadd.f32 %v2320_v35, %v2319_v34  ;;  %v2322_v37 = vpop.f32.mrb[18].mxu0 }
 0x121   : > { %v2323_v38 = vpop.f32.mrb[19].mxu0 }
 0x122   : > { %v2482_v39 = vadd.f32 %v2321_v36, %v2269_v14  ;;  %v2324_v40 = vadd.f32 %v2323_v38, %v2322_v37 }
 0x124   : > { %v2488_v41 = vadd.f32 %v2324_v40, %v2272_v12 }
 0x126   : > { %v2325_v44 = vpop.f32.mrb[20].mxu0 }
 0x127   : > { %v2326_v45 = vpop.f32.mrb[21].mxu0 }
 0x128   : > { %v2327_v46 = vadd.f32 %v2326_v45, %v2325_v44  ;;  %v2328_v47 = vpop.f32.mrb[22].mxu0 }
 0x129   : > { %v2329_v48 = vpop.f32.mrb[23].mxu0 }
 0x12a   : > { %v2479_v49 = vadd.f32 %v2327_v46, %v2275_v19  ;;  %v2330_v50 = vadd.f32 %v2329_v48, %v2328_v47 }
 0x12c   : > { %v2485_v51 = vadd.f32 %v2330_v50, %v2278_v21 }
 0x12e   : > { %v2331_v52 = vpop.f32.mrb[24].mxu0 }
 0x12f   : > { %v2332_v54 = vpop.f32.mrb[25].mxu0 }
 0x130   : > { %v2333_v55 = vadd.f32 %v2332_v54, %v2331_v52  ;;  %v2334_v56 = vpop.f32.mrb[26].mxu0 }
 0x131   : > { %v2335_v57 = vpop.f32.mrb[27].mxu0 }
 0x132   : > { %v2494_v58 = vadd.f32 %v2333_v55, %v2281_v24  ;;  %v2336_v59 = vadd.f32 %v2335_v57, %v2334_v56 }
 0x134   : > { %v2500_v60 = vadd.f32 %v2336_v59, %v2284_v27 }
 0x136   : > { %v2337_v61 = vpop.f32.mrb[28].mxu0 }
 0x137   : > { %v2338_v62 = vpop.f32.mrb[29].mxu0 }
 0x138   : > { %v2339_v63 = vadd.f32 %v2338_v62, %v2337_v61  ;;  %v2340_v0 = vpop.f32.mrb[30].mxu0 }
 0x139   : > { %v2341_v1 = vpop.f32.mrb[31].mxu0 }
 0x13a   : > { %v2491_v3 = vadd.f32 %v2339_v63, %v2287_v29  ;;  %v2342_v4 = vadd.f32 %v2341_v1, %v2340_v0 }
 0x13c   : > { %v2497_v5 = vadd.f32 %v2342_v4, %v2290_v33 }
 0x13e   : > { %v2371_v6 = vpop.f32.mrb[32].mxu0 }
 0x13f   : > { %v2473_v7 = vpop.f32.mrb[0].mxu1  ;;  %v2372_v8 = vpop.f32.mrb[33].mxu0 }
 0x140   : > { %v2373_v9 = vadd.f32 %v2372_v8, %v2371_v6  ;;  %v1633_v10 = vpop.f32.mrb[1].mxu1  ;;  %v2374_v11 = vpop.f32.mrb[34].mxu0 }
 0x141   : > { %v2474_v42 = vpop.f32.mrb[2].mxu1  ;;  %v2375_v43 = vpop.f32.mrb[35].mxu0 }
 0x142   : > { %v2483_v53 = vadd.f32 %v2482_v39, %v2373_v9  ;;  %v2376_v13 = vadd.f32 %v2375_v43, %v2374_v11  ;;  %v1636_v14 = vpop.f32.mrb[3].mxu1 }
 0x144   : > { %v3118_v15 = vadd.f32 %v2483_v53, %v1633_v10  ;;  %v2489_v16 = vadd.f32 %v2488_v41, %v2376_v13 }
 0x146   : > { %v3120_v12 = vadd.f32 %v2489_v16, %v1636_v14  ;;  %v2377_v18 = vpop.f32.mrb[36].mxu0 }
 0x147   : > { %v2477_v17 = vpop.f32.mrb[4].mxu1  ;;  %v2378_v19 = vpop.f32.mrb[37].mxu0 }
 0x148   : > { %v2231_v2 = vpack.c.bf16 %v3120_v12, %v3118_v15  ;;  %v1728_v20 = vadd.f32 %v3120_v12, %v3118_v15  ;;  %v2379_v21 = vadd.f32 %v2378_v19, %v2377_v18  ;;  %v1649_v23 = vpop.f32.mrb[5].mxu1  ;;  %v2380_v22 = vpop.f32.mrb[38].mxu0 }
 0x149   : > { %v2478_v24 = vpop.f32.mrb[6].mxu1  ;;  %v2381_v25 = vpop.f32.mrb[39].mxu0 }
 0x14a   : > { %2232 = vst [vmem:[%s3127_s20] sm:$0xff] %v2231_v2   ;;  %v2480_v26 = vadd.f32 %v2479_v49, %v2379_v21  ;;  %v2382_v27 = vadd.f32 %v2381_v25, %v2380_v22  ;;  %v1652_v28 = vpop.f32.mrb[7].mxu1 }
 0x14c   : > { %v2481_v30 = vadd.f32 %v2480_v26, %v2473_v7  ;;  %v2486_v29 = vadd.f32 %v2485_v51, %v2382_v27 }
 0x14e   : > { %v1729_v31 = vadd.f32 %v2481_v30, %v1728_v20  ;;  %v2487_v32 = vadd.f32 %v2486_v29, %v2474_v42  ;;  %v2383_v33 = vpop.f32.mrb[40].mxu0 }
 0x14f   : > { %v2384_v34 = vpop.f32.mrb[41].mxu0 }
 0x150   : > { %v2236_v35 = vpack.c.bf16 %v2487_v32, %v2481_v30  ;;  %v1730_v36 = vadd.f32 %v2487_v32, %v1729_v31  ;;  %v2385_v37 = vadd.f32 %v2384_v34, %v2383_v33  ;;  %v2386_v38 = vpop.f32.mrb[42].mxu0 }
 0x151   : > { %v2387_v39 = vpop.f32.mrb[43].mxu0 }
 0x152   : > { %2248 = vst [vmem:[%s3127_s20 + $0x8] sm:$0xff] %v2236_v35   ;;  %v2495_v40 = vadd.f32 %v2494_v58, %v2385_v37  ;;  %v2388_v41 = vadd.f32 %v2387_v39, %v2386_v38 }
 0x154   : > { %v2496_v44 = vadd.f32 %v2495_v40, %v1649_v23  ;;  %v2501_v45 = vadd.f32 %v2500_v60, %v2388_v41 }
 0x156   : > { %v1731_v46 = vadd.f32 %v2496_v44, %v1730_v36  ;;  %v2502_v47 = vadd.f32 %v2501_v45, %v1652_v28  ;;  %v2389_v48 = vpop.f32.mrb[44].mxu0 }
 0x157   : > { %v2390_v49 = vpop.f32.mrb[45].mxu0 }
 0x158   : > { %v2241_v50 = vpack.c.bf16 %v2502_v47, %v2496_v44  ;;  %v1732_v51 = vadd.f32 %v2502_v47, %v1731_v46  ;;  %v2391_v52 = vadd.f32 %v2390_v49, %v2389_v48  ;;  %v2392_v54 = vpop.f32.mrb[46].mxu0 }
 0x159   : > { %v2393_v55 = vpop.f32.mrb[47].mxu0 }
 0x15a   : > { %2249 = vst [vmem:[%s3127_s20 + $0x10] sm:$0xff] %v2241_v50   ;;  %v2492_v56 = vadd.f32 %v2491_v3, %v2391_v52  ;;  %v2394_v57 = vadd.f32 %v2393_v55, %v2392_v54 }
 0x15c   : > { %v2493_v58 = vadd.f32 %v2492_v56, %v2477_v17  ;;  %v2498_v59 = vadd.f32 %v2497_v5, %v2394_v57 }
 0x15e   : > { %v1733_v61 = vadd.f32 %v2493_v58, %v1732_v51  ;;  %v2499_v60 = vadd.f32 %v2498_v59, %v2478_v24 }
 0x160   : > { %v2246_v62 = vpack.c.bf16 %v2499_v60, %v2493_v58  ;;  %v1734_v63 = vadd.f32 %v2499_v60, %v1733_v61 }
 0x162   : > { %2250 = vst [vmem:[%s3127_s20 + $0x18] sm:$0xff] %v2246_v62   ;;  %v1735_v0 = vrot.slane %v1734_v63, 4 }
 0x164   : > { %v1736_v1 = vadd.f32 %v1735_v0, %v1734_v63 }
 0x166   : > { %v1737_v4 = vrot.slane %v1736_v1, 2 }
 0x168   : > { %v1738_v6 = vadd.f32 %v1737_v4, %v1736_v1 }
 0x16a   : > { %v1739_v7 = vrot.slane %v1738_v6, 1 }
 0x16c   : > { %v1740_v3 = vadd.f32 %v1739_v7, %v1738_v6 }
 0x16e   : > { %v1741_v5 = vmul.f32 0.015625, %v1740_v3 }
 0x170   : > { %v1742_v8 = vsub.f32 %v3118_v15, %v1741_v5  ;;  %v1743_v9 = vsub.f32 %v3120_v12, %v1741_v5  ;;  %v1744_v10 = vsub.f32 %v2481_v30, %v1741_v5  ;;  %v1745_v11 = vsub.f32 %v2487_v32, %v1741_v5  ;;  %1750 = vst [vmem:[%s503_s24] sm:$0x1] %v1741_v5 }
 0x171   : > { %v1746_v42 = vsub.f32 %v2496_v44, %v1741_v5  ;;  %v1747_v43 = vsub.f32 %v2502_v47, %v1741_v5  ;;  %v1748_v53 = vsub.f32 %v2493_v58, %v1741_v5  ;;  %v1749_v13 = vsub.f32 %v2499_v60, %v1741_v5 }
 0x172   : > { %v1751_v14 = vmul.f32 %v1742_v8, %v1742_v8  ;;  %v1752_v16 = vmul.f32 %v1743_v9, %v1743_v9  ;;  %v1753_v18 = vmul.f32 %v1744_v10, %v1744_v10  ;;  %v1754_v19 = vmul.f32 %v1745_v11, %v1745_v11 }
 0x173   : > { %v1755_v20 = vmul.f32 %v1746_v42, %v1746_v42  ;;  %v1756_v23 = vmul.f32 %v1747_v43, %v1747_v43  ;;  %v1757_v22 = vmul.f32 %v1748_v53, %v1748_v53  ;;  %v1758_v24 = vmul.f32 %v1749_v13, %v1749_v13 }
 0x174   : > { %v1759_v17 = vadd.f32 %v1752_v16, %v1751_v14 }
 0x176   : > { %v1760_v2 = vadd.f32 %v1759_v17, %v1753_v18 }
 0x178   : > { %v1761_v21 = vadd.f32 %v1760_v2, %v1754_v19 }
 0x17a   : > { %v1762_v15 = vadd.f32 %v1761_v21, %v1755_v20 }
 0x17c   : > { %v1763_v12 = vadd.f32 %v1762_v15, %v1756_v23 }
 0x17e   : > { %v1764_v25 = vadd.f32 %v1763_v12, %v1757_v22 }
 0x180   : > { %v1765_v26 = vadd.f32 %v1764_v25, %v1758_v24 }
 0x182   : > { %v1766_v27 = vrot.slane %v1765_v26, 4 }
 0x184   : > { %v1767_v28 = vadd.f32 %v1766_v27, %v1765_v26 }
 0x186   : > { %v1768_v30 = vrot.slane %v1767_v28, 2 }
 0x188   : > { %v1769_v29 = vadd.f32 %v1768_v30, %v1767_v28 }
 0x18a   : > { %v1770_v31 = vrot.slane %v1769_v29, 1 }
 0x18c   : > { %v1771_v32 = vadd.f32 %v1770_v31, %v1769_v29 }
 0x18e   : > { %1772 = vst [vmem:[%s510_s14] sm:$0x1] %v1771_v32 }
 0x18f PF: > { %s19_s4 = sadd.s32 1, %s2673_s4   ;;  %s3181_s27 = smov %s2665_s29 }
 0x190   : > { %p16_p13 = scmp.ge.s32.totalorder %s19_s4, 10   ;;  %s3182_s28 = smov %s2669_s30 }
 0x191   : > { %s3183_s29 = smov %s3186_s5  ;;  %s3184_s30 = smov %s3190_s9 }
 0x192   :  { %18 = sbr.rel (!%p16_p13) target bundleno = 3 (0x3), region = 106 }

// kernel: unet_conv2_forward.4
= control target key start
LH: loop header
LB: loop body
LE: loop exit
PB: predicated region body
PF: predicated region fallthrough
CT: control target
= control target key end

     0   :  { %s2773_s27 = smov 0   ;;  %s2775_s28 = smov 0   ;;  %s3270_s0 = inlined_call_operand.vmem [shape: bf16[2,16,16,128], index: 0, kind: input, shape index: {}, may-alias: {0,1,2}]   ;;  %s3271_s1 = inlined_call_operand.vmem [shape: bf16[2,16,16,128], index: 1, kind: input, shape index: {}, may-alias: {0,1,2}]   ;;  %s3272_s2 = inlined_call_operand.vmem [shape: bf16[2,16,16,128], index: 2, kind: input, shape index: {}, may-alias: {0,1,2}]   ;;  %s3273_s3 = inlined_call_operand.vmem [shape: bf16[3,384,128], index: 3, kind: input, shape index: {}]   ;;  %s3274_s4 = inlined_call_operand.vmem [shape: f32[1,128], index: 4, kind: input, shape index: {}]   ;;  %s3275_s5 = inlined_call_operand.vmem [shape: f32[1,128], index: 5, kind: input, shape index: {}]   ;;  %s3276_s6 = inlined_call_operand.vmem [shape: bf16[2,16,16,128], index: 6, kind: output, shape index: {0}]   ;;  %s3277_s7 = inlined_call_operand.vmem [shape: f32[2,4,1,128], index: 7, kind: output, shape index: {1}]   ;;  %s3278_s8 = inlined_call_operand.vmem [shape: f32[2,4,1,128], index: 8, kind: output, shape index: {2}]  }
   0x1   :  { %s2777_s29 = smov 0   ;;  %s2779_s30 = smov 0  }
   0x2   :  { %s2781_s9 = smov 0  }
   0x3 LB: > { %s28_s10 = sadd.s32 1, %s2718_s29  ;;  %s31_s11 = sadd.s32 1, %s2722_s30  ;;  %s2726_s9 = sphi %s2781_s9, %s19_s9   ;;  %s2722_s30 = sphi %s2779_s30, %s3293_s30   ;;  %s2718_s29 = sphi %s2777_s29, %s3292_s29   ;;  %s2714_s28 = sphi %s2775_s28, %s3291_s28   ;;  %s2710_s27 = sphi %s2773_s27, %s3290_s27  }
   0x4   : > { %p29_p0 = scmp.ge.s32.totalorder %s28_s10, 4  ;;  %p2036_p1 = scmp.ge.s32.totalorder %s2726_s9, 1 }
   0x5   : > { %p357_p2 = scmp.lt.s32.totalorder %s2726_s9, 9 }
   0x6   : > { %s3295_s10 = smov (%p29_p0, %s28_s10), 0  ;;  %s3297_s11 = smov (!%p29_p0, %s31_s11), %s2722_s30 }
   0x7   : > { %p358_p3 = pnand %p2036_p1, %p357_p2  ;;  %p33_p4 = scmp.ge.s32.totalorder %s3297_s11, 2 }
   0x8   : > { %v2616_v0 = vld [vmem:[%s3273_s3 + $0x40] sm:$0xff] (!%p358_p3)   ;;  %s2809_s14 = sshll.u32 (!%p358_p3), %s2710_s27, 2  ;;  %p442_p5 = scmp.lt.s32.totalorder (!%p358_p3), %s2714_s28, 1  ;;  %v2619_v3 = vld [vmem:[%s3273_s3 + $0x48] sm:$0xff] (!%p358_p3)   ;;  %v2622_v6 = vld [vmem:[%s3273_s3 + $0x50] sm:$0xff] (!%p358_p3)   ;;  %vm650_vm3 = vcmask (!%p358_p3), 1040384  }
   0x9   : > { %s3299_s11 = smov (%p33_p4, %s3297_s11), 0  ;;  %361 = sbr.rel (%p358_p3) target bundleno = 399 (0x18f), region = 44 }
   0xa   : > { %3279 = sst [smem:[#allocation3_spill]] %s3299_s11  ;;  %v2617_v1 = vld [vmem:[%s3273_s3 + $0x80] sm:$0xff] (!%p358_p3)   ;;  %2308 = vmatprep.subr.bf16.mxu0 (!%p358_p3), %v2616_v0  ;;  %p444_p6 = scmp.lt.s32.totalorder (!%p358_p3), %s2809_s14, 15  ;;  %v2620_v4 = vld [vmem:[%s3273_s3 + $0x88] sm:$0xff] (!%p358_p3)   ;;  %v2623_v7 = vld [vmem:[%s3273_s3 + $0x90] sm:$0xff] (!%p358_p3)   ;;  %vm677_vm5 = vcmask (!%p358_p3), 1047552  }
   0xb   : > { %v2618_v2 = vld [vmem:[%s3273_s3] sm:$0xff] (!%p358_p3)   ;;  %2464 = vmatprep.subr.bf16.mxu1 (!%p358_p3), %v2617_v1  ;;  %v2621_v5 = vld [vmem:[%s3273_s3 + $0x8] sm:$0xff] (!%p358_p3)   ;;  %s2042_s17 = sadd.s32 (!%p358_p3), 4294967295, %s2809_s14  ;;  %v2624_v8 = vld [vmem:[%s3273_s3 + $0x10] sm:$0xff] (!%p358_p3)   ;;  %s470_s18 = sadd.s32 (!%p358_p3), 4, %s2809_s14 }
   0xc   : > { %2309 = vmatpush3.bf16.msra.mxu0 (!%p358_p3), %v2618_v2  ;;  %2465 = vmatpush3.bf16.msra.mxu1 (!%p358_p3), %v2617_v1  ;;  %v2625_v9 = vld [vmem:[%s3273_s3 + $0x58] sm:$0xff] (!%p358_p3)   ;;  %p454_p7 = scmp.gt.s32.totalorder (!%p358_p3), %s2042_s17, 0  ;;  %p2043_p8 = scmp.lt.s32.totalorder (!%p358_p3), %s2042_s17, 15  ;;  %v2628_v12 = vld [vmem:[%s3273_s3 + $0x60] sm:$0xff] (!%p358_p3)   ;;  %v2631_v15 = vld [vmem:[%s3273_s3 + $0x68] sm:$0xff] (!%p358_p3)  }
   0xd   : > { %2310 = vmatprep.subr.bf16.mxu0 (!%p358_p3), %v2619_v3  ;;  %2466 = vmatprep.subr.bf16.mxu1 (!%p358_p3), %v2620_v4  ;;  %v2626_v10 = vld [vmem:[%s3273_s3 + $0x98] sm:$0xff] (!%p358_p3)   ;;  %v2629_v13 = vld [vmem:[%s3273_s3 + $0xa0] sm:$0xff] (!%p358_p3)   ;;  %p2865_p9 = scmp.lt.s32.totalorder (!%p358_p3), %s470_s18, 15  ;;  %v2632_v16 = vld [vmem:[%s3273_s3 + $0xa8] sm:$0xff] (!%p358_p3)   ;;  %p592_p10 = scmp.eq.s32.totalorder (!%p358_p3), %s2710_s27, 0 }
   0xe   : > { %v2627_v11 = vld [vmem:[%s3273_s3 + $0x18] sm:$0xff] (!%p358_p3)   ;;  %v2630_v14 = vld [vmem:[%s3273_s3 + $0x20] sm:$0xff] (!%p358_p3)   ;;  %v2633_v17 = vld [vmem:[%s3273_s3 + $0x28] sm:$0xff] (!%p358_p3)   ;;  %vm651_vm0 = vsmask.f32 (!%p358_p3), 256  ;;  %p597_p11 = scmp.eq.s32.totalorder (!%p358_p3), %s2710_s27, 3 }
   0xf   : > { %v2634_v18 = vld [vmem:[%s3273_s3 + $0x70] sm:$0xff] (!%p358_p3)   ;;  %v2909_v23 = vld [vmem:[%s3274_s4] ss:$0 sm:$0xff] (!%p358_p3)  ;;  %v2637_v24 = vld [vmem:[%s3273_s3 + $0x78] sm:$0xff] (!%p358_p3)   ;;  %vm678_vm4 = vsmask.f32 (!%p358_p3), 7424 }
  0x10   : > { %s3301_s28 = smov (!%p442_p5, %s2714_s28), 1  ;;  %2311 = vmatpush3.bf16.msra.mxu0 %v2621_v5  ;;  %2467 = vmatpush3.bf16.msra.mxu1 %v2620_v4  ;;  %s3303_s17 = smov (!%p454_p7, %s2042_s17), 0  ;;  %v2635_v19 = vld [vmem:[%s3273_s3 + $0xb0] sm:$0xff]   ;;  %v2638_v25 = vld [vmem:[%s3273_s3 + $0xb8] sm:$0xff]   ;;  %v2923_v29 = vld [vmem:[%s3275_s5] ss:$0 sm:$0xff] }
  0x11   : > { %s445_s23 = scalar_select %p444_p6, %s2809_s14, 15  ;;  %2312 = vmatprep.subr.bf16.mxu0 %v2622_v6  ;;  %2468 = vmatprep.subr.bf16.mxu1 %v2623_v7  ;;  %v2636_v20 = vld [vmem:[%s3273_s3 + $0x30] sm:$0xff]   ;;  %v2639_v31 = vld [vmem:[%s3273_s3 + $0x38] sm:$0xff]   ;;  %v2640_v36 = vld [vmem:[%s3273_s3 + $0x100] sm:$0xff]  }
  0x12   : > { %s2834_s13 = sshll.u32 %s3301_s28, 5  ;;  %s3305_s17 = smov (!%p2043_p8, %s3303_s17), 15  ;;  %v2641_v43 = vld [vmem:[%s3273_s3 + $0x140] sm:$0xff]   ;;  %vm2963_vm6 = vmand %vm650_vm3, %vm651_vm0 }
  0x13   : > { %s2038_s20 = sshll.u32 %s445_s23, 1  ;;  %s2048_s25 = sshll.u32 %s3305_s17, 1  ;;  %vm2968_vm7 = vmand %vm677_vm5, %vm678_vm4  ;;  %v2642_v5 = vld [vmem:[%s3273_s3 + $0xc0] sm:$0xff]  }
  0x14   : > { %2313 = vmatpush3.bf16.msra.mxu0 %v2624_v8  ;;  %2469 = vmatpush3.bf16.msra.mxu1 %v2623_v7  ;;  %s2856_s16 = sadd.s32 %s2834_s13, %s2038_s20  ;;  %s462_s23 = sadd.s32 %s2048_s25, %s2834_s13 }
  0x15   : > { %2314 = vmatprep.subr.bf16.mxu0 %v2625_v9  ;;  %2470 = vmatprep.subr.bf16.mxu1 %v2626_v10  ;;  %s2040_s12 = sshll.u32 %s2856_s16, 2  ;;  %s2050_s17 = sshll.u32 %s462_s23, 2 }
  0x16   : > { %s3307_s18 = smov (!%p2865_p9, %s470_s18), 15  ;;  %s2890_s15 = scalar_lea.vmem %s3270_s0, %s2040_s12 }
  0x17   : > { %s464_s21 = scalar_lea.vmem %s3271_s1, %s2050_s17  ;;  %s3309_s18 = smov (!%p2865_p9, %s3307_s18), 15  ;;  %v2263_v22 = vld [vmem:[%s2890_s15] sm:$0xff]  }
  0x18   : > { %2315 = vmatpush3.bf16.msra.mxu0 %v2627_v11  ;;  %2471 = vmatpush3.bf16.msra.mxu1 %v2626_v10  ;;  %s2055_s25 = sshll.u32 %s3309_s18, 1  ;;  %v2259_v21 = vld [vmem:[%s464_s21] sm:$0xff]   ;;  %v2264_v28 = vunpack.c.l.bf16 %v2263_v22  ;;  %v2265_v30 = vunpack.c.h.bf16 %v2263_v22  ;;  %v2302_v11 = vld [vmem:[%s2890_s15 + $0x8] sm:$0xff]   ;;  %p499_p12 = scmp.lt.s32.totalorder %s2710_s27, 3 }
  0x19   : > { %2316 = vmatprep.subr.bf16.mxu0 %v2628_v12  ;;  %2472 = vmatprep.subr.bf16.mxu1 %v2629_v13  ;;  %s479_s20 = sadd.s32 %s2055_s25, %s2834_s13  ;;  %v2260_v26 = vunpack.c.l.bf16 %v2259_v21  ;;  %v2261_v27 = vunpack.c.h.bf16 %v2259_v21  ;;  %v2643_v12 = vld [vmem:[%s3273_s3 + $0x108] sm:$0xff]   ;;  %s3230_s13 = scalar_lea.vmem %s3276_s6, %s2040_s12 }
  0x1a   : > { %s2057_s22 = sshll.u32 %s479_s20, 2  ;;  %v555_v35 = vmul.f32 %v2264_v28, %v2909_v23  ;;  %v556_v37 = vmul.f32 %v2265_v30, %v2909_v23  ;;  %s3311_s27 = smov (!%p499_p12, %s2710_s27), 3 }
  0x1b   : > { %s481_s24 = scalar_lea.vmem %s3272_s2, %s2057_s22  ;;  %v534_v33 = vmul.f32 %v2260_v26, %v2909_v23  ;;  %v535_v34 = vmul.f32 %v2261_v27, %v2909_v23  ;;  %v2647_v27 = vld [vmem:[%s3273_s3 + $0x150] sm:$0xff]   ;;  %s2062_s16 = sshll.u32 %s3301_s28, 2 }
  0x1c   : > { %2317 = vmatpush3.bf16.msra.mxu0 %v2630_v14  ;;  %2473 = vmatpush3.bf16.msra.mxu1 %v2629_v13  ;;  %v2279_v32 = vld [vmem:[%s481_s24] sm:$0xff]   ;;  %s593_s20 = scalar_select %p592_p10, 1, 0  ;;  %v563_v44 = vadd.f32 %v2923_v29, %v555_v35  ;;  %v564_v45 = vadd.f32 %v2923_v29, %v556_v37  ;;  %v2268_v13 = vunpack.c.l.bf16 %v2302_v11  ;;  %v2269_v14 = vunpack.c.h.bf16 %v2302_v11  ;;  %v2303_v35 = vld [vmem:[%s2890_s15 + $0x10] sm:$0xff]  }
  0x1d   : > { %2318 = vmatprep.subr.bf16.mxu0 %v2631_v15  ;;  %2474 = vmatprep.subr.bf16.mxu1 %v2632_v16  ;;  %v2280_v38 = vunpack.c.l.bf16 %v2279_v32  ;;  %v2281_v39 = vunpack.c.h.bf16 %v2279_v32  ;;  %v542_v40 = vadd.f32 %v2923_v29, %v534_v33  ;;  %v543_v41 = vadd.f32 %v2923_v29, %v535_v34  ;;  %s598_s21 = scalar_select %p597_p11, 1, 0  ;;  %v2648_v32 = vld [vmem:[%s3273_s3 + $0xd0] sm:$0xff]  }
  0x1e   : > { %v594_v42 = vstv %s593_s20  ;;  %v571_v51 = vmax.f32 %v563_v44, 0.0  ;;  %v572_v52 = vmax.f32 %v564_v45, 0.0  ;;  %v558_v21 = vmul.f32 %v2269_v14, %v2909_v23  ;;  %v2650_v44 = vld [vmem:[%s3273_s3 + $0x158] sm:$0xff]   ;;  %s3243_s12 = sadd.s32 %s2062_s16, %s3311_s27 }
  0x1f   : > { %v585_v46 = vmul.f32 %v2280_v38, %v2909_v23  ;;  %v586_v47 = vmul.f32 %v2281_v39, %v2909_v23  ;;  %v544_v48 = vmax.f32 %v542_v40, 0.0  ;;  %v545_v49 = vmax.f32 %v543_v41, 0.0  ;;  %v2649_v41 = vld [vmem:[%s3273_s3 + $0x118] sm:$0xff]   ;;  %s503_s24 = scalar_lea.vmem %s3277_s7, %s3243_s12  ;;  %s510_s14 = scalar_lea.vmem %s3278_s8, %s3243_s12 }
  0x20   : > { %2319 = vmatpush3.bf16.msra.mxu0 %v2633_v17  ;;  %2475 = vmatpush3.bf16.msra.mxu1 %v2632_v16  ;;  %vm2946_vm1 = vcmp.eq.s32.totalorder %v594_v42, 1  ;;  %v2954_v56 = vpack.c.bf16 %v572_v52, %v571_v51  ;;  %v599_v22 = vstv %s598_s21  ;;  %v566_v30 = vadd.f32 %v2923_v29, %v558_v21 }
  0x21   : > { %2320 = vmatprep.subr.bf16.mxu0 %v2634_v18  ;;  %2476 = vmatprep.subr.bf16.mxu1 %v2635_v19  ;;  %vm2090_vm2 = vmneg %vm2946_vm1  ;;  %v587_v53 = vadd.f32 %v2923_v29, %v585_v46  ;;  %v588_v54 = vadd.f32 %v2923_v29, %v586_v47  ;;  %v546_v55 = vpack.c.bf16 %v545_v49, %v544_v48  ;;  %v2644_v18 = vld [vmem:[%s3273_s3 + $0x148] sm:$0xff]   ;;  %vm3003_vm8 = vcmp.eq.s32.totalorder %v599_v22, 1  ;;  %v2651_v48 = vld [vmem:[%s3273_s3 + $0xd8] sm:$0xff]  }
  0x22   : > { %v610_v61 = vshrl.u32 %v2954_v56, 16  ;;  %v613_v62 = vshll.u32 %v2954_v56, 16  ;;  %v574_v34 = vmax.f32 %v566_v30, 0.0  ;;  %v2272_v38 = vunpack.c.l.bf16 %v2303_v35  ;;  %v2664_v30 = vld [vmem:[%s3273_s3 + $0x1c0] sm:$0xff]   ;;  %vm2236_vm9 = vmneg %vm3003_vm8 }
  0x23   : > { %v596_v57 = vsel %vm2946_vm1, 0, %v546_v55  ;;  %2091 = vmatprep.mubr.msk.bf16.mxu0 %vm2090_vm2, %v546_v55  ;;  %v589_v58 = vmax.f32 %v587_v53, 0.0  ;;  %v590_v0 = vmax.f32 %v588_v54, 0.0  ;;  %v2273_v39 = vunpack.c.h.bf16 %v2303_v35  ;;  %v2668_v35 = vld [vmem:[%s3273_s3 + $0x208] sm:$0xff]  }
  0x24   : > { %2321 = vmatpush3.bf16.msra.mxu0 %v2636_v20  ;;  %2477 = vmatpush3.bf16.msra.mxu1 %v2635_v19  ;;  %v603_v59 = vshrl.u32 %v596_v57, 16  ;;  %v606_v60 = vshll.u32 %v596_v57, 16  ;;  %v661_v4 = vrot.slane %v613_v62, 1  ;;  %v612_v10 = vrot.slane %v610_v61, 7  ;;  %v2645_v19 = vld [vmem:[%s3273_s3 + $0xc8] sm:$0xff]   ;;  %v2652_v57 = vld [vmem:[%s3273_s3 + $0x120] sm:$0xff]  }
  0x25   : > { %2322 = vmatprep.subr.bf16.mxu0 %v2637_v24  ;;  %2478 = vmatprep.subr.bf16.mxu1 %v2638_v25  ;;  %v2975_v6 = vpack.c.bf16 %v590_v0, %v589_v58  ;;  %v557_v20 = vmul.f32 %v2268_v13, %v2909_v23  ;;  %v559_v45 = vmul.f32 %v2272_v38, %v2909_v23  ;;  %v2653_v58 = vld [vmem:[%s3273_s3 + $0x160] sm:$0xff]   ;;  %v2657_v13 = vld [vmem:[%s3273_s3 + $0xe8] sm:$0xff]  }
  0x26   : > { %v605_v1 = vrot.slane %v603_v59, 7  ;;  %v659_v2 = vrot.slane %v606_v60, 1  ;;  %v662_v9 = vor.u32 %v661_v4, %v610_v61  ;;  %v615_v24 = vor.u32 %v613_v62, %v612_v10  ;;  %v2654_v0 = vld [vmem:[%s3273_s3 + $0xe0] sm:$0xff]   ;;  %v2655_v4 = vld [vmem:[%s3273_s3 + $0x128] sm:$0xff]  }
  0x27   : > { %v565_v28 = vadd.f32 %v2923_v29, %v557_v20  ;;  %v560_v46 = vmul.f32 %v2273_v39, %v2909_v23  ;;  %v567_v52 = vadd.f32 %v2923_v29, %v559_v45  ;;  %v2656_v10 = vld [vmem:[%s3273_s3 + $0x168] sm:$0xff]   ;;  %v2672_v45 = vld [vmem:[%s3273_s3 + $0x190] sm:$0xff]  }
  0x28   : > { %2323 = vmatpush3.bf16.msra.mxu0 %v2639_v31  ;;  %2479 = vmatpush3.bf16.msra.mxu1 %v2638_v25  ;;  %v608_v7 = vor.u32 %v606_v60, %v605_v1  ;;  %v660_v8 = vor.u32 %v659_v2, %v603_v59  ;;  %v2989_v17 = vsel %vm2968_vm7, %v662_v9, 0  ;;  %v2646_v25 = vld [vmem:[%s3273_s3 + $0x110] sm:$0xff]   ;;  %v601_v31 = vsel %vm3003_vm8, 0, %v2975_v6  ;;  %v2669_v39 = vld [vmem:[%s3273_s3 + $0x188] sm:$0xff]  }
  0x29   : > { %2360 = vmatprep.subr.bf16.mxu0 %v2640_v36  ;;  %2488 = vmatprep.subr.bf16.mxu1 %v2641_v43  ;;  %v573_v33 = vmax.f32 %v565_v28, 0.0  ;;  %v638_v36 = vshrl.u32 %v601_v31, 16  ;;  %v3022_v37 = vsel %vm2963_vm6, 0, %v615_v24  ;;  %v641_v40 = vshll.u32 %v601_v31, 16  ;;  %v2660_v24 = vld [vmem:[%s3273_s3 + $0xf0] sm:$0xff]   ;;  %v2663_v28 = vld [vmem:[%s3273_s3 + $0xf8] sm:$0xff]  }
  0x2a   : > { %v653_v15 = vsel %vm2963_vm6, 0, %v608_v7  ;;  %v680_v16 = vsel %vm2968_vm7, %v660_v8, 0  ;;  %v568_v53 = vadd.f32 %v2923_v29, %v560_v46  ;;  %v575_v60 = vmax.f32 %v567_v52, 0.0  ;;  %v2665_v31 = vld [vmem:[%s3273_s3 + $0x200] sm:$0xff]  }
  0x2b   : > { %911 = vmatmul.mubr.bf16.vlgmr.msra.gmra.mrb[0].mxu0 %v653_v15  ;;  %2480 = vmatprep.mubr.bf16.mxu1 %v680_v16  ;;  %v3027_v42 = vpack.c.bf16 %v574_v34, %v573_v33  ;;  %v669_v47 = vrot.slane %v641_v40, 1  ;;  %v2658_v15 = vld [vmem:[%s3273_s3 + $0x130] sm:$0xff]   ;;  %v2676_v52 = vld [vmem:[%s3273_s3 + $0x1e0] sm:$0xff]  }
  0x2c   : > { %2481 = vmatmul.mubr.bf16.vlgmr.msra.gmra.mrb[0].mxu1 %v2989_v17  ;;  %2361 = vmatpush3.bf16.msra.mxu0 %v2642_v5  ;;  %v576_v61 = vmax.f32 %v568_v53, 0.0 }
  0x2d   : > { %2489 = vmatpush3.bf16.msra.mxu1 %v2641_v43  ;;  %2362 = vmatprep.subr.bf16.mxu0 %v2643_v12  ;;  %v640_v43 = vrot.slane %v638_v36, 7  ;;  %v617_v49 = vshrl.u32 %v3027_v42, 16  ;;  %v620_v50 = vshll.u32 %v3027_v42, 16  ;;  %v3045_v54 = vor.u32 %v669_v47, %v638_v36  ;;  %v2674_v47 = vld [vmem:[%s3273_s3 + $0x218] sm:$0xff]  }
  0x2e   : > { %2490 = vmatprep.subr.bf16.mxu1 %v2644_v18  ;;  %918 = vmatprep.mubr.bf16.mxu0 %v2954_v56  ;;  %v3062_v5 = vpack.c.bf16 %v576_v61, %v575_v60  ;;  %v2679_v60 = vld [vmem:[%s3273_s3 + $0x1e8] sm:$0xff]  }
  0x2f   : > { %v3040_v51 = vor.u32 %v641_v40, %v640_v43  ;;  %v619_v55 = vrot.slane %v617_v49, 7  ;;  %v663_v59 = vrot.slane %v620_v50, 1  ;;  %v685_v2 = vsel %vm2968_vm7, %v3045_v54, 0  ;;  %v2670_v40 = vld [vmem:[%s3273_s3 + $0x1d0] sm:$0xff]  }
  0x30   : > { %2363 = vmatpush3.bf16.msra.mxu0 %v2645_v19  ;;  %v624_v11 = vshrl.u32 %v3062_v5, 16  ;;  %v627_v12 = vshll.u32 %v3062_v5, 16  ;;  %v2659_v19 = vld [vmem:[%s3273_s3 + $0x170] sm:$0xff]  }
  0x31   : > { %2491 = vmatpush3.bf16.msra.mxu1 %v2644_v18  ;;  %2364 = vmatprep.subr.bf16.mxu0 %v2646_v25  ;;  %v622_v62 = vor.u32 %v620_v50, %v619_v55  ;;  %v664_v1 = vor.u32 %v663_v59, %v617_v49  ;;  %v658_v7 = vsel %vm2963_vm6, 0, %v3040_v51  ;;  %v2661_v25 = vld [vmem:[%s3273_s3 + $0x138] sm:$0xff]   ;;  %v2677_v55 = vld [vmem:[%s3273_s3 + $0x220] sm:$0xff]  }
  0x32   : > { %2492 = vmatprep.subr.bf16.mxu1 %v2647_v27  ;;  %v626_v14 = vrot.slane %v624_v11, 7  ;;  %v665_v16 = vrot.slane %v627_v12, 1  ;;  %v2675_v49 = vld [vmem:[%s3273_s3 + $0x198] sm:$0xff]  }
  0x33   : > { %919 = vmatmul.mubr.bf16.gmra.mrb[4].mxu0 %v3022_v37  ;;  %v3069_v8 = vsel %vm2963_vm6, 0, %v622_v62  ;;  %v3073_v9 = vsel %vm2968_vm7, %v664_v1, 0  ;;  %v2680_v62 = vld [vmem:[%s3273_s3 + $0x228] sm:$0xff]  }
  0x34   : > { %2365 = vmatpush3.bf16.msra.mxu0 %v2648_v32  ;;  %926 = vmatprep.mubr.bf16.mxu0 %v3027_v42  ;;  %v629_v18 = vor.u32 %v627_v12, %v626_v14  ;;  %v666_v20 = vor.u32 %v665_v16, %v624_v11  ;;  %v2304_v32 = vld [vmem:[%s2890_s15 + $0x18] sm:$0xff]   ;;  %v2684_v11 = vld [vmem:[%s3273_s3 + $0x1b0] sm:$0xff]  }
  0x35   : > { %2493 = vmatpush3.bf16.msra.mxu1 %v2647_v27  ;;  %2366 = vmatprep.subr.bf16.mxu0 %v2649_v41  ;;  %v2662_v27 = vld [vmem:[%s3273_s3 + $0x178] sm:$0xff]   ;;  %v2276_v33 = vunpack.c.l.bf16 %v2304_v32  ;;  %v2277_v34 = vunpack.c.h.bf16 %v2304_v32 }
  0x36   : > { %2494 = vmatprep.subr.bf16.mxu1 %v2650_v44  ;;  %2484 = vmatprep.mubr.bf16.mxu1 %v3073_v9  ;;  %v3094_v21 = vsel %vm2963_vm6, 0, %v629_v18  ;;  %v3098_v22 = vsel %vm2968_vm7, %v666_v20, 0  ;;  %v2685_v12 = vld [vmem:[%s3273_s3 + $0x1f8] sm:$0xff]  }
  0x37   : > { %2485 = vmatmul.mubr.bf16.gmra.mrb[4].mxu1 %v3098_v22  ;;  %v561_v36 = vmul.f32 %v2276_v33, %v2909_v23  ;;  %v562_v38 = vmul.f32 %v2277_v34, %v2909_v23  ;;  %v2671_v23 = vld [vmem:[%s3273_s3 + $0x210] sm:$0xff]   ;;  %v2687_v14 = vld [vmem:[%s3273_s3 + $0x1b8] sm:$0xff]  }
  0x38   : > { %2367 = vmatpush3.bf16.msra.mxu0 %v2651_v48  ;;  %2504 = vmatprep.mubr.bf16.mxu1 %v2989_v17  ;;  %v2666_v17 = vld [vmem:[%s3273_s3 + $0x180] sm:$0xff]  }
  0x39   : > { %2495 = vmatpush3.bf16.msra.mxu1 %v2650_v44  ;;  %2368 = vmatprep.subr.bf16.mxu0 %v2652_v57  ;;  %v569_v41 = vadd.f32 %v2923_v29, %v561_v36 }
  0x3a   : > { %2496 = vmatprep.subr.bf16.mxu1 %v2653_v58 }
  0x3b   : > { %927 = vmatmul.mubr.bf16.gmra.mrb[8].mxu0 %v3069_v8  ;;  %v577_v43 = vmax.f32 %v569_v41, 0.0 }
  0x3c   : > { %2369 = vmatpush3.bf16.msra.mxu0 %v2654_v0  ;;  %934 = vmatprep.mubr.bf16.mxu0 %v3062_v5  ;;  %v2681_v0 = vld [vmem:[%s3273_s3 + $0x1a8] sm:$0xff]  }
  0x3d   : > { %2497 = vmatpush3.bf16.msra.mxu1 %v2653_v58  ;;  %2370 = vmatprep.subr.bf16.mxu0 %v2655_v4  ;;  %v2678_v58 = vld [vmem:[%s3273_s3 + $0x1a0] sm:$0xff]   ;;  %v2682_v4 = vld [vmem:[%s3273_s3 + $0x1f0] sm:$0xff]  }
  0x3e   : > { %2498 = vmatprep.subr.bf16.mxu1 %v2656_v10 }
  0x40   : > { %2371 = vmatpush3.bf16.msra.mxu0 %v2657_v13  ;;  %v2686_v13 = vld [vmem:[%s3273_s3 + $0x238] sm:$0xff]  }
  0x41   : > { %2499 = vmatpush3.bf16.msra.mxu1 %v2656_v10  ;;  %2372 = vmatprep.subr.bf16.mxu0 %v2658_v15  ;;  %v2683_v10 = vld [vmem:[%s3273_s3 + $0x230] sm:$0xff]  }
  0x42   : > { %2500 = vmatprep.subr.bf16.mxu1 %v2659_v19 }
  0x43   : > { %935 = vmatmul.mubr.bf16.gmra.mrb[12].mxu0 %v3094_v21 }
  0x44   : > { %2373 = vmatpush3.bf16.msra.mxu0 %v2660_v24  ;;  %1249 = vmatprep.mubr.bf16.mxu0 %v2954_v56  ;;  %v2667_v56 = vld [vmem:[%s3273_s3 + $0x1c8] sm:$0xff]  }
  0x45   : > { %2501 = vmatpush3.bf16.msra.mxu1 %v2659_v19  ;;  %2374 = vmatprep.subr.bf16.mxu0 %v2661_v25 }
  0x46   : > { %2502 = vmatprep.subr.bf16.mxu1 %v2662_v27 }
  0x48   : > { %2375 = vmatpush3.bf16.msra.mxu0 %v2663_v28 }
  0x49   : > { %2503 = vmatpush3.bf16.msra.mxu1 %v2662_v27  ;;  %2412 = vmatprep.subr.bf16.mxu0 %v2664_v30 }
  0x4a   : > { %2512 = vmatprep.subr.bf16.mxu1 %v2665_v31 }
  0x4b   : > { %1250 = vmatmul.mubr.bf16.vlgmr.msra.gmra.mrb[16].mxu0 %v3022_v37  ;;  %v570_v37 = vadd.f32 %v2923_v29, %v562_v38  ;;  %v2673_v29 = vld [vmem:[%s3273_s3 + $0x1d8] sm:$0xff]  }
  0x4c   : > { %2505 = vmatmul.mubr.bf16.vlgmr.msra.gmra.mrb[0].mxu1 %v3073_v9  ;;  %2413 = vmatpush3.bf16.msra.mxu0 %v2666_v17 }
  0x4d   : > { %2513 = vmatpush3.bf16.msra.mxu1 %v2665_v31  ;;  %2414 = vmatprep.subr.bf16.mxu0 %v2667_v56  ;;  %v578_v44 = vmax.f32 %v570_v37, 0.0 }
  0x4e   : > { %2514 = vmatprep.subr.bf16.mxu1 %v2668_v35  ;;  %1257 = vmatprep.mubr.bf16.mxu0 %v3027_v42 }
  0x4f   : > { %2508 = vmatprep.mubr.bf16.mxu1 %v3098_v22  ;;  %v582_v46 = vpack.c.bf16 %v578_v44, %v577_v43 }
  0x50   : > { %2415 = vmatpush3.bf16.msra.mxu0 %v2669_v39 }
  0x51   : > { %2515 = vmatpush3.bf16.msra.mxu1 %v2668_v35  ;;  %2416 = vmatprep.subr.bf16.mxu0 %v2670_v40  ;;  %v634_v48 = vshll.u32 %v582_v46, 16  ;;  %v631_v50 = vshrl.u32 %v582_v46, 16 }
  0x52   : > { %2516 = vmatprep.subr.bf16.mxu1 %v2671_v23 }
  0x53   : > { %1258 = vmatmul.mubr.bf16.gmra.mrb[20].mxu0 %v3069_v8  ;;  %v667_v53 = vrot.slane %v634_v48, 1  ;;  %v633_v59 = vrot.slane %v631_v50, 7 }
  0x54   : > { %2417 = vmatpush3.bf16.msra.mxu0 %v2672_v45  ;;  %1265 = vmatprep.mubr.bf16.mxu0 %v3062_v5 }
  0x55   : > { %2517 = vmatpush3.bf16.msra.mxu1 %v2671_v23  ;;  %2418 = vmatprep.subr.bf16.mxu0 %v2673_v29  ;;  %v668_v57 = vor.u32 %v667_v53, %v631_v50  ;;  %v636_v1 = vor.u32 %v634_v48, %v633_v59 }
  0x56   : > { %2518 = vmatprep.subr.bf16.mxu1 %v2674_v47 }
  0x57   : > { %v684_v61 = vsel %vm2968_vm7, %v668_v57, 0 }
  0x58   : > { %2419 = vmatpush3.bf16.msra.mxu0 %v2675_v49  ;;  %2509 = vmatmul.mubr.bf16.gmra.mrb[4].mxu1 %v684_v61 }
  0x59   : > { %2519 = vmatpush3.bf16.msra.mxu1 %v2674_v47  ;;  %2420 = vmatprep.subr.bf16.mxu0 %v2676_v52 }
  0x5a   : > { %2520 = vmatprep.subr.bf16.mxu1 %v2677_v55  ;;  %2528 = vmatprep.mubr.bf16.mxu1 %v3073_v9  ;;  %v657_v9 = vsel %vm2963_vm6, 0, %v636_v1 }
  0x5b   : > { %1266 = vmatmul.mubr.bf16.gmra.mrb[24].mxu0 %v3094_v21 }
  0x5c   : > { %2421 = vmatpush3.bf16.msra.mxu0 %v2678_v58  ;;  %1273 = vmatprep.mubr.bf16.mxu0 %v582_v46 }
  0x5d   : > { %2521 = vmatpush3.bf16.msra.mxu1 %v2677_v55  ;;  %2422 = vmatprep.subr.bf16.mxu0 %v2679_v60 }
  0x5e   : > { %2522 = vmatprep.subr.bf16.mxu1 %v2680_v62 }
  0x60   : > { %2423 = vmatpush3.bf16.msra.mxu0 %v2681_v0 }
  0x61   : > { %2523 = vmatpush3.bf16.msra.mxu1 %v2680_v62  ;;  %2424 = vmatprep.subr.bf16.mxu0 %v2682_v4 }
  0x62   : > { %2524 = vmatprep.subr.bf16.mxu1 %v2683_v10 }
  0x63   : > { %1274 = vmatmul.mubr.bf16.gmra.mrb[28].mxu0 %v657_v9 }
  0x64   : > { %2425 = vmatpush3.bf16.msra.mxu0 %v2684_v11  ;;  %1596 = vmatprep.mubr.bf16.mxu0 %v3027_v42 }
  0x65   : > { %2525 = vmatpush3.bf16.msra.mxu1 %v2683_v10  ;;  %2426 = vmatprep.subr.bf16.mxu0 %v2685_v12 }
  0x66   : > { %2526 = vmatprep.subr.bf16.mxu1 %v2686_v13 }
  0x68   : > { %2427 = vmatpush3.bf16.msra.mxu0 %v2687_v14 }
  0x69   : > { %2527 = vmatpush3.bf16.msra.mxu1 %v2686_v13 }
  0x6b   : > { %1597 = vmatmul.mubr.bf16.vlgmr.msra.gmra.mrb[32].mxu0 %v3069_v8 }
  0x6c   : > { %2529 = vmatmul.mubr.bf16.vlgmr.msra.gmra.mrb[0].mxu1 %v3098_v22  ;;  %1604 = vmatprep.mubr.bf16.mxu0 %v3062_v5 }
  0x6d   : > { %2532 = vmatprep.mubr.bf16.mxu1 %v684_v61 }
  0x73   : > { %1605 = vmatmul.mubr.bf16.gmra.mrb[36].mxu0 %v3094_v21 }
  0x74   : > { %2533 = vmatmul.mubr.bf16.gmra.mrb[4].mxu1 %v685_v2  ;;  %1612 = vmatprep.mubr.bf16.mxu0 %v582_v46 }
  0x7b   : > { %1613 = vmatmul.mubr.bf16.gmra.mrb[40].mxu0 %v657_v9 }
  0x7c   : > { %2237 = vmatprep.mubr.msk.bf16.mxu0 %vm2236_vm9, %v2975_v6 }
  0x83   : > { %1621 = vmatmul.mubr.bf16.gmra.mrb[44].mxu0 %v658_v7 }
  0xfe   : > { %v2324_v42 = vpop.f32.mrb[0].mxu0 }
  0xff   : > { %v2325_v5 = vpop.f32.mrb[1].mxu0 }
 0x100   : > { %v2326_v8 = vadd.f32 %v2325_v5, %v2324_v42  ;;  %v2327_v15 = vpop.f32.mrb[2].mxu0 }
 0x101   : > { %v2328_v3 = vpop.f32.mrb[3].mxu0 }
 0x102   : > { %v2329_v16 = vadd.f32 %v2328_v3, %v2327_v15 }
 0x106   : > { %v2330_v54 = vpop.f32.mrb[4].mxu0 }
 0x107   : > { %v2331_v2 = vpop.f32.mrb[5].mxu0 }
 0x108   : > { %v2332_v18 = vadd.f32 %v2331_v2, %v2330_v54  ;;  %v2333_v19 = vpop.f32.mrb[6].mxu0 }
 0x109   : > { %v2334_v26 = vpop.f32.mrb[7].mxu0 }
 0x10a   : > { %v2335_v20 = vadd.f32 %v2334_v26, %v2333_v19 }
 0x10e   : > { %v2336_v21 = vpop.f32.mrb[8].mxu0 }
 0x10f   : > { %v2337_v22 = vpop.f32.mrb[9].mxu0 }
 0x110   : > { %v2338_v6 = vadd.f32 %v2337_v22, %v2336_v21  ;;  %v2339_v24 = vpop.f32.mrb[10].mxu0 }
 0x111   : > { %v2340_v63 = vpop.f32.mrb[11].mxu0 }
 0x112   : > { %v2341_v25 = vadd.f32 %v2340_v63, %v2339_v24 }
 0x116   : > { %v2342_v51 = vpop.f32.mrb[12].mxu0 }
 0x117   : > { %v2343_v7 = vpop.f32.mrb[13].mxu0 }
 0x118   : > { %v2344_v27 = vadd.f32 %v2343_v7, %v2342_v51  ;;  %v2345_v28 = vpop.f32.mrb[14].mxu0 }
 0x119   : > { %v2346_v30 = vpop.f32.mrb[15].mxu0 }
 0x11a   : > { %v2347_v31 = vadd.f32 %v2346_v30, %v2345_v28 }
 0x11e   : > { %v2376_v17 = vpop.f32.mrb[16].mxu0 }
 0x11f   : > { %v2377_v32 = vpop.f32.mrb[17].mxu0 }
 0x120   : > { %v2378_v56 = vadd.f32 %v2377_v32, %v2376_v17  ;;  %v2379_v33 = vpop.f32.mrb[18].mxu0 }
 0x121   : > { %v2380_v34 = vpop.f32.mrb[19].mxu0 }
 0x122   : > { %v2539_v35 = vadd.f32 %v2378_v56, %v2326_v8  ;;  %v2381_v36 = vadd.f32 %v2380_v34, %v2379_v33 }
 0x124   : > { %v2545_v38 = vadd.f32 %v2381_v36, %v2329_v16 }
 0x126   : > { %v2382_v39 = vpop.f32.mrb[20].mxu0 }
 0x127   : > { %v2383_v40 = vpop.f32.mrb[21].mxu0 }
 0x128   : > { %v2384_v41 = vadd.f32 %v2383_v40, %v2382_v39  ;;  %v2385_v37 = vpop.f32.mrb[22].mxu0 }
 0x129   : > { %v2386_v23 = vpop.f32.mrb[23].mxu0 }
 0x12a   : > { %v2536_v43 = vadd.f32 %v2384_v41, %v2332_v18  ;;  %v2387_v44 = vadd.f32 %v2386_v23, %v2385_v37 }
 0x12c   : > { %v2542_v45 = vadd.f32 %v2387_v44, %v2335_v20 }
 0x12e   : > { %v2388_v29 = vpop.f32.mrb[24].mxu0 }
 0x12f   : > { %v2389_v46 = vpop.f32.mrb[25].mxu0 }
 0x130   : > { %v2390_v47 = vadd.f32 %v2389_v46, %v2388_v29  ;;  %v2391_v48 = vpop.f32.mrb[26].mxu0 }
 0x131   : > { %v2392_v49 = vpop.f32.mrb[27].mxu0 }
 0x132   : > { %v2551_v50 = vadd.f32 %v2390_v47, %v2338_v6  ;;  %v2393_v52 = vadd.f32 %v2392_v49, %v2391_v48 }
 0x134   : > { %v2557_v53 = vadd.f32 %v2393_v52, %v2341_v25 }
 0x136   : > { %v2394_v55 = vpop.f32.mrb[28].mxu0 }
 0x137   : > { %v2395_v57 = vpop.f32.mrb[29].mxu0 }
 0x138   : > { %v2396_v58 = vadd.f32 %v2395_v57, %v2394_v55  ;;  %v2397_v59 = vpop.f32.mrb[30].mxu0 }
 0x139   : > { %v2398_v60 = vpop.f32.mrb[31].mxu0 }
 0x13a   : > { %v2548_v61 = vadd.f32 %v2396_v58, %v2344_v27  ;;  %v2399_v62 = vadd.f32 %v2398_v60, %v2397_v59 }
 0x13c   : > { %v2554_v0 = vadd.f32 %v2399_v62, %v2347_v31 }
 0x13e   : > { %v2428_v1 = vpop.f32.mrb[32].mxu0 }
 0x13f   : > { %v2530_v4 = vpop.f32.mrb[0].mxu1  ;;  %v2429_v10 = vpop.f32.mrb[33].mxu0 }
 0x140   : > { %v2430_v9 = vadd.f32 %v2429_v10, %v2428_v1  ;;  %v1663_v11 = vpop.f32.mrb[1].mxu1  ;;  %v2431_v12 = vpop.f32.mrb[34].mxu0 }
 0x141   : > { %v2531_v13 = vpop.f32.mrb[2].mxu1  ;;  %v2432_v14 = vpop.f32.mrb[35].mxu0 }
 0x142   : > { %v2540_v42 = vadd.f32 %v2539_v35, %v2430_v9  ;;  %v2433_v5 = vadd.f32 %v2432_v14, %v2431_v12  ;;  %v1666_v8 = vpop.f32.mrb[3].mxu1 }
 0x144   : > { %v3221_v15 = vadd.f32 %v2540_v42, %v1663_v11  ;;  %v2546_v3 = vadd.f32 %v2545_v38, %v2433_v5 }
 0x146   : > { %v3223_v16 = vadd.f32 %v2546_v3, %v1666_v8  ;;  %v2434_v54 = vpop.f32.mrb[36].mxu0 }
 0x147   : > { %v2534_v2 = vpop.f32.mrb[4].mxu1  ;;  %v2435_v18 = vpop.f32.mrb[37].mxu0 }
 0x148   : > { %v2285_v19 = vpack.c.bf16 %v3223_v16, %v3221_v15  ;;  %v1758_v26 = vadd.f32 %v3223_v16, %v3221_v15  ;;  %v2436_v20 = vadd.f32 %v2435_v18, %v2434_v54  ;;  %v1679_v21 = vpop.f32.mrb[5].mxu1  ;;  %v2437_v22 = vpop.f32.mrb[38].mxu0 }
 0x149   : > { %v2535_v6 = vpop.f32.mrb[6].mxu1  ;;  %v2438_v24 = vpop.f32.mrb[39].mxu0 }
 0x14a   : > { %2286 = vst [vmem:[%s3230_s13] sm:$0xff] %v2285_v19   ;;  %v2537_v63 = vadd.f32 %v2536_v43, %v2436_v20  ;;  %v2439_v25 = vadd.f32 %v2438_v24, %v2437_v22  ;;  %v1682_v51 = vpop.f32.mrb[7].mxu1 }
 0x14c   : > { %v2538_v7 = vadd.f32 %v2537_v63, %v2530_v4  ;;  %v2543_v27 = vadd.f32 %v2542_v45, %v2439_v25 }
 0x14e   : > { %v1759_v28 = vadd.f32 %v2538_v7, %v1758_v26  ;;  %v2544_v30 = vadd.f32 %v2543_v27, %v2531_v13  ;;  %v2440_v31 = vpop.f32.mrb[40].mxu0 }
 0x14f   : > { %v2441_v17 = vpop.f32.mrb[41].mxu0 }
 0x150   : > { %v2290_v32 = vpack.c.bf16 %v2544_v30, %v2538_v7  ;;  %v1760_v56 = vadd.f32 %v2544_v30, %v1759_v28  ;;  %v2442_v33 = vadd.f32 %v2441_v17, %v2440_v31  ;;  %v2443_v34 = vpop.f32.mrb[42].mxu0 }
 0x151   : > { %v2444_v35 = vpop.f32.mrb[43].mxu0 }
 0x152   : > { %2305 = vst [vmem:[%s3230_s13 + $0x8] sm:$0xff] %v2290_v32   ;;  %v2552_v36 = vadd.f32 %v2551_v50, %v2442_v33  ;;  %v2445_v38 = vadd.f32 %v2444_v35, %v2443_v34 }
 0x154   : > { %v2553_v39 = vadd.f32 %v2552_v36, %v1679_v21  ;;  %v2558_v40 = vadd.f32 %v2557_v53, %v2445_v38 }
 0x156   : > { %v1761_v41 = vadd.f32 %v2553_v39, %v1760_v56  ;;  %v2559_v37 = vadd.f32 %v2558_v40, %v1682_v51  ;;  %v2446_v23 = vpop.f32.mrb[44].mxu0 }
 0x157   : > { %v2447_v43 = vpop.f32.mrb[45].mxu0 }
 0x158   : > { %v2295_v44 = vpack.c.bf16 %v2559_v37, %v2553_v39  ;;  %v1762_v45 = vadd.f32 %v2559_v37, %v1761_v41  ;;  %v2448_v29 = vadd.f32 %v2447_v43, %v2446_v23  ;;  %v2449_v46 = vpop.f32.mrb[46].mxu0 }
 0x159   : > { %v2450_v47 = vpop.f32.mrb[47].mxu0 }
 0x15a   : > { %2306 = vst [vmem:[%s3230_s13 + $0x10] sm:$0xff] %v2295_v44   ;;  %v2549_v48 = vadd.f32 %v2548_v61, %v2448_v29  ;;  %v2451_v49 = vadd.f32 %v2450_v47, %v2449_v46 }
 0x15c   : > { %v2550_v50 = vadd.f32 %v2549_v48, %v2534_v2  ;;  %v2555_v52 = vadd.f32 %v2554_v0, %v2451_v49 }
 0x15e   : > { %v1763_v55 = vadd.f32 %v2550_v50, %v1762_v45  ;;  %v2556_v53 = vadd.f32 %v2555_v52, %v2535_v6 }
 0x160   : > { %v2300_v57 = vpack.c.bf16 %v2556_v53, %v2550_v50  ;;  %v1764_v58 = vadd.f32 %v2556_v53, %v1763_v55 }
 0x162   : > { %2307 = vst [vmem:[%s3230_s13 + $0x18] sm:$0xff] %v2300_v57   ;;  %v1765_v59 = vrot.slane %v1764_v58, 4 }
 0x164   : > { %v1766_v60 = vadd.f32 %v1765_v59, %v1764_v58 }
 0x166   : > { %v1767_v62 = vrot.slane %v1766_v60, 2 }
 0x168   : > { %v1768_v1 = vadd.f32 %v1767_v62, %v1766_v60 }
 0x16a   : > { %v1769_v4 = vrot.slane %v1768_v1, 1 }
 0x16c   : > { %v1770_v61 = vadd.f32 %v1769_v4, %v1768_v1 }
 0x16e   : > { %v1771_v0 = vmul.f32 0.015625, %v1770_v61 }
 0x170   : > { %v1772_v10 = vsub.f32 %v3221_v15, %v1771_v0  ;;  %v1773_v9 = vsub.f32 %v3223_v16, %v1771_v0  ;;  %v1774_v11 = vsub.f32 %v2538_v7, %v1771_v0  ;;  %v1775_v12 = vsub.f32 %v2544_v30, %v1771_v0  ;;  %1780 = vst [vmem:[%s503_s24] sm:$0x1] %v1771_v0 }
 0x171   : > { %v1776_v13 = vsub.f32 %v2553_v39, %v1771_v0  ;;  %v1777_v14 = vsub.f32 %v2559_v37, %v1771_v0  ;;  %v1778_v42 = vsub.f32 %v2550_v50, %v1771_v0  ;;  %v1779_v5 = vsub.f32 %v2556_v53, %v1771_v0 }
 0x172   : > { %v1781_v8 = vmul.f32 %v1772_v10, %v1772_v10  ;;  %v1782_v3 = vmul.f32 %v1773_v9, %v1773_v9  ;;  %v1783_v54 = vmul.f32 %v1774_v11, %v1774_v11  ;;  %v1784_v18 = vmul.f32 %v1775_v12, %v1775_v12 }
 0x173   : > { %v1785_v26 = vmul.f32 %v1776_v13, %v1776_v13  ;;  %v1786_v21 = vmul.f32 %v1777_v14, %v1777_v14  ;;  %v1787_v22 = vmul.f32 %v1778_v42, %v1778_v42  ;;  %v1788_v6 = vmul.f32 %v1779_v5, %v1779_v5 }
 0x174   : > { %v1789_v2 = vadd.f32 %v1782_v3, %v1781_v8 }
 0x176   : > { %v1790_v19 = vadd.f32 %v1789_v2, %v1783_v54 }
 0x178   : > { %v1791_v20 = vadd.f32 %v1790_v19, %v1784_v18 }
 0x17a   : > { %v1792_v15 = vadd.f32 %v1791_v20, %v1785_v26 }
 0x17c   : > { %v1793_v16 = vadd.f32 %v1792_v15, %v1786_v21 }
 0x17e   : > { %v1794_v24 = vadd.f32 %v1793_v16, %v1787_v22 }
 0x180   : > { %v1795_v63 = vadd.f32 %v1794_v24, %v1788_v6 }
 0x182   : > { %v1796_v25 = vrot.slane %v1795_v63, 4 }
 0x184   : > { %v1797_v51 = vadd.f32 %v1796_v25, %v1795_v63 }
 0x186   : > { %v1798_v7 = vrot.slane %v1797_v51, 2 }
 0x188   : > { %v1799_v27 = vadd.f32 %v1798_v7, %v1797_v51 }
 0x18a   : > { %v1800_v28 = vrot.slane %v1799_v27, 1 }
 0x18c   : > { %v1801_v30 = vadd.f32 %v1800_v28, %v1799_v27 }
 0x18e   : > { %1802 = vst [vmem:[%s510_s14] sm:$0x1] %v1801_v30 }
 0x18f PF: > { %s19_s9 = sadd.s32 1, %s2726_s9   ;;  %s3289_s25 = sld [smem:[#allocation3_spill]] }
 0x190   : > { %p16_p13 = scmp.ge.s32.totalorder %s19_s9, 10   ;;  %s3290_s27 = smov %s2718_s29 }
 0x191   : > { %s3291_s28 = smov %s2722_s30  ;;  %s3292_s29 = smov %s3295_s10 }
 0x192   :  { %18 = sbr.rel (!%p16_p13) target bundleno = 3 (0x3), region = 106 }
 0x195   : > { %s3293_s30 = smov %s3289_s25 }

</bundles_post_ra>
